<compile_context>
chip_gen: v7x
topology: tpu7x:2x2x1
jax: 0.10.0
libtpu: 0.0.40
codegen_flags: <defaults>
</compile_context>

<pallas_src>
import numpy as np
import jax
import jax.numpy as jnp
from jax.experimental import pallas as pl
from jax.experimental.pallas import tpu as pltpu


def _bilinear_matrix(out_size: int, in_size: int) -> np.ndarray:
    """Dense (out_size, in_size) 1-D bilinear resize matrix, align_corners=True."""
    m = np.zeros((out_size, in_size), dtype=np.float32)
    if out_size == 1 or in_size == 1:
        m[:, 0] = 1.0
        return m
    scale = (in_size - 1) / (out_size - 1)
    for i in range(out_size):
        src = i * scale
        i0 = min(int(np.floor(src)), in_size - 1)
        i1 = min(i0 + 1, in_size - 1)
        f = src - i0
        m[i, i0] += 1.0 - f
        m[i, i1] += f
    return m


def _vmem_limit_bytes() -> int:
    """Generation-aware scoped-VMEM limit: ~3/4 of physical, capped at 96 MiB."""
    cap = 64 * 1024 * 1024  # conservative fallback (safe on every generation)
    try:
        cap = int(pltpu.get_tpu_info().vmem_capacity_bytes)
    except Exception:
        pass
    return min((cap * 3) // 4, 96 * 1024 * 1024)


# ----------------------- kernel 1: bilinear resize (align_corners=True) -----------------------

def _resize_kernel(x_ref, rxt_ref, ryt_ref, o_ref):
    cb, hx, wx = x_ref.shape
    ws = rxt_ref.shape[1]
    hs = ryt_ref.shape[1]
    # W-resize: single (cb*Hx, Wx) @ (Wx, Ws) MXU matmul over every plane in the block.
    xw = jnp.dot(x_ref[...].reshape(cb * hx, wx), rxt_ref[...],
                 preferred_element_type=jnp.float32).reshape(cb, hx, ws)
    # Move Hx to the minor dim with per-plane 2-D transposes (XLU slot; the MXU work stays fused).
    xwt = jnp.stack([xw[c].T for c in range(cb)], axis=0)                 # (cb, ws, hx) f32
    # H-resize: single (cb*Ws, Hx) @ (Hx, Hs) MXU matmul.
    xh = jnp.dot(xwt.reshape(cb * ws, hx).astype(jnp.bfloat16), ryt_ref[...],
                 preferred_element_type=jnp.float32)                      # (cb*ws, hs)
    o_ref[...] = xh.reshape(cb, ws, hs).astype(o_ref.dtype)               # planes stored (c, Ws, Hs)


def _bilinear_resize_planes(x_planes, ryt, rxt, vmem_limit):
    """(NC, Hx, Wx) bf16 -> (NC, Ws, Hs) bf16 (W/H swapped in the output layout; the wrapper's
    NHWC transpose absorbs it)."""
    nc, hx, wx = x_planes.shape
    ws = rxt.shape[1]
    hs = ryt.shape[1]
    budget = vmem_limit // 2
    per_c = 2 * (hx * wx * 2 + ws * hs * 2) + (hx * ws + ws * hx + ws * hs) * 4
    cb = max(1, min(nc, budget // max(per_c, 1), 64))
    if nc >= 2:
        cb = min(cb, (nc + 1) // 2)   # keep >= 2 grid steps so both v7x TensorCores get work
    ncp = ((nc + cb - 1) // cb) * cb
    if ncp != nc:
        x_planes = jnp.pad(x_planes, ((0, ncp - nc), (0, 0), (0, 0)))
    out = pl.pallas_call(
        _resize_kernel,
        out_shape=jax.ShapeDtypeStruct((ncp, ws, hs), jnp.bfloat16),
        grid=(ncp // cb,),
        in_specs=[
            pl.BlockSpec((cb, hx, wx), lambda i: (i, 0, 0)),
            pl.BlockSpec((wx, ws), lambda i: (0, 0)),
            pl.BlockSpec((hx, hs), lambda i: (0, 0)),
        ],
        out_specs=pl.BlockSpec((cb, ws, hs), lambda i: (i, 0, 0)),
        compiler_params=pltpu.CompilerParams(
            dimension_semantics=("parallel",), vmem_limit_bytes=vmem_limit),
    )(x_planes, rxt, ryt)
    return out[:nc]


# ------------- kernel 2: 3x3 conv (tap-fused single matmul) + bias + BN partial stats -------------

def _conv_stats_kernel(xm_ref, xt_ref, xb_ref, w_ref, b_ref, y_ref, st_ref):
    _, th, ws, ci = xm_ref.shape
    cop = w_ref.shape[1]
    j = pl.program_id(1)
    last = pl.num_programs(1) - 1
    mid = xm_ref[0]                                                       # (th, ws, ci) bf16
    # Halo rows: clamped in the index_map, zeroed here at the image borders.
    top = xt_ref[0] * jnp.where(j == 0, 0.0, 1.0).astype(mid.dtype)
    bot = xb_ref[0] * jnp.where(j == last, 0.0, 1.0).astype(mid.dtype)
    rows = jnp.concatenate([top, mid, bot], axis=0)                       # (th+2, ws, ci)
    zcol = jnp.zeros((th + 2, 1, ci), rows.dtype)
    blk = jnp.concatenate([zcol, rows, zcol], axis=1)                     # (th+2, ws+2, ci)
    # In-VMEM im2col -> single (th*ws, 9*ci) @ (9*ci, cop) MXU matmul (tap fusion).
    taps = [blk[dy:dy + th, dx:dx + ws, :] for dy in range(3) for dx in range(3)]
    patches = jnp.concatenate(taps, axis=-1).reshape(th * ws, 9 * ci)     # bf16
    acc = jnp.dot(patches, w_ref[...], preferred_element_type=jnp.float32) + b_ref[...]
    y_ref[0] = acc.reshape(th, ws, cop).astype(y_ref.dtype)
    # Per-block mean-centred partial statistics (combined with Chan's formula in JAX).
    inv_cnt = 1.0 / (th * ws)
    bsum = jnp.sum(acc, axis=0, keepdims=True)                            # (1, cop)
    bm2 = jnp.sum((acc - bsum * inv_cnt) ** 2, axis=0, keepdims=True)     # (1, cop)
    st_ref[0, 0] = jnp.concatenate([bsum, bm2], axis=0)                   # (2, cop)


def _pick_rows_per_block(n, hs, ws, ci, cop, budget):
    """Largest divisor of Hs whose per-step VMEM footprint (I/O double-buffers, im2col temp,
    f32 accumulator, weights) fits the budget; keeps >= 2 total blocks when possible."""
    best = 1
    for th in range(1, hs + 1):
        if hs % th:
            continue
        act = (th + 2) * (ws + 2) * ci * 2                   # assembled halo block (bf16)
        col = th * ws * 9 * ci * 2                           # im2col patches (bf16)
        acc = th * ws * cop * 4                              # f32 accumulator
        io = 2 * ((th + 2) * ws * ci * 2 + th * ws * cop * 2 + 2 * cop * 4)
        wbuf = 9 * ci * cop * 2 + cop * 4
        if act + col + acc + io + wbuf <= budget:
            best = th
    if n * (hs // best) < 2:                                 # keep both v7x cores busy
        for th in range(best - 1, 0, -1):
            if hs % th == 0:
                best = th
                break
    return best


# --------------------------------------- full module ---------------------------------------

@jax.jit
def upsample_bn(x, skip_x, w, b, gamma, beta, eps=1e-5):
    N, Cx, Hx, Wx = x.shape
    Ns, Cs, Hs, Ws = skip_x.shape
    Co, Ci, kh, kw = w.shape
    assert N == Ns and Ci == Cx + Cs and (kh, kw) == (3, 3)
    cop = max(128, ((Co + 127) // 128) * 128)                # lane-dense padded output channels
    vmem_limit = _vmem_limit_bytes()

    # ---- kernel 1: bilinear upsample (align_corners=True), bf16 in/out ----
    ryt = jnp.asarray(_bilinear_matrix(Hs, Hx).T, jnp.bfloat16)       # (Hx, Hs)
    rxt = jnp.asarray(_bilinear_matrix(Ws, Wx).T, jnp.bfloat16)       # (Wx, Ws)
    up = _bilinear_resize_planes(
        x.reshape(N * Cx, Hx, Wx).astype(jnp.bfloat16), ryt, rxt, vmem_limit)  # (N*Cx, Ws, Hs)
    up_nhwc = up.reshape(N, Cx, Ws, Hs).transpose(0, 3, 2, 1)          # (N, Hs, Ws, Cx)

    # ---- glue: single NHWC bf16 concat (no spatial pad, no halo stack) ----
    skip_nhwc = skip_x.astype(jnp.bfloat16).transpose(0, 2, 3, 1)      # (N, Hs, Ws, Cs)
    cat = jnp.concatenate([up_nhwc, skip_nhwc], axis=-1)               # (N, Hs, Ws, Ci)

    # Conv weights as one tap-major (9*Ci, cop) slab matching the in-kernel im2col order.
    w_flat = jnp.transpose(w, (2, 3, 1, 0)).reshape(9 * Ci, Co)
    w_flat = jnp.pad(w_flat, ((0, 0), (0, cop - Co))).astype(jnp.bfloat16)
    b_pad = jnp.pad(b.astype(jnp.float32), (0, cop - Co)).reshape(1, cop)

    th = _pick_rows_per_block(N, Hs, Ws, Ci, cop, vmem_limit // 2)
    nhb = Hs // th

    y, st = pl.pallas_call(
        _conv_stats_kernel,
        out_shape=(jax.ShapeDtypeStruct((N, Hs, Ws, cop), jnp.bfloat16),
                   jax.ShapeDtypeStruct((N, nhb, 2, cop), jnp.float32)),
        grid=(N, nhb),
        in_specs=[
            pl.BlockSpec((1, th, Ws, Ci), lambda n, j: (n, j, 0, 0)),
            pl.BlockSpec((1, 1, Ws, Ci),
                         lambda n, j: (n, jnp.maximum(j * th - 1, 0), 0, 0)),
            pl.BlockSpec((1, 1, Ws, Ci),
                         lambda n, j: (n, jnp.minimum((j + 1) * th, Hs - 1), 0, 0)),
            pl.BlockSpec((9 * Ci, cop), lambda n, j: (0, 0)),
            pl.BlockSpec((1, cop), lambda n, j: (0, 0)),
        ],
        out_specs=(pl.BlockSpec((1, th, Ws, cop), lambda n, j: (n, j, 0, 0)),
                   pl.BlockSpec((1, 1, 2, cop), lambda n, j: (n, j, 0, 0))),
        compiler_params=pltpu.CompilerParams(
            dimension_semantics=("parallel", "parallel"),
            vmem_limit_bytes=vmem_limit),
    )(cat, cat, cat, w_flat, b_pad)

    # ---- exact batch statistics: combine per-block (sum, M2) with Chan's formula ----
    cnt = th * Ws
    total = N * Hs * Ws
    stf = st.reshape(N * nhb, 2, cop)
    bsum, bm2 = stf[:, 0, :], stf[:, 1, :]
    mean = jnp.sum(bsum, axis=0) / total
    bmean = bsum / cnt
    var = (jnp.sum(bm2, axis=0) + cnt * jnp.sum((bmean - mean) ** 2, axis=0)) / total
    var = jnp.maximum(var, 0.0)                              # biased variance (training mode)

    # ---- fused XLA epilogue: BN scale/shift + ReLU + channel slice + NCHW transpose ----
    inv = jax.lax.rsqrt(var + eps)
    scale = jnp.pad(gamma.astype(jnp.float32), (0, cop - Co)) * inv
    shift = jnp.pad(beta.astype(jnp.float32), (0, cop - Co)) - mean * scale
    out = jnp.maximum(y.astype(jnp.float32) * scale + shift, 0.0)
    return out[..., :Co].transpose(0, 3, 1, 2)               # back to NCHW


# ----------------------------- pure-JAX f32 reference -----------------------------

def upsample_bn_ref(x, skip_x, w, b, gamma, beta, eps=1e-5):
    N, Cx, Hx, Wx = x.shape
    _, Cs, Hs, Ws = skip_x.shape
    ry = jnp.asarray(_bilinear_matrix(Hs, Hx))
    rx = jnp.asarray(_bilinear_matrix(Ws, Wx))
    up = jnp.einsum('hH,ncHW,wW->nchw', ry, x, rx)
    cat = jnp.concatenate([up, skip_x], axis=1)
    y = jax.lax.conv_general_dilated(
        cat, w, window_strides=(1, 1), padding=((1, 1), (1, 1)),
        dimension_numbers=('NCHW', 'OIHW', 'NCHW'))
    y = y + b.reshape(1, -1, 1, 1)
    mean = y.mean(axis=(0, 2, 3), keepdims=True)
    var = ((y - mean) ** 2).mean(axis=(0, 2, 3), keepdims=True)
    y = (y - mean) * jax.lax.rsqrt(var + eps)
    y = y * gamma.reshape(1, -1, 1, 1) + beta.reshape(1, -1, 1, 1)
    return jnp.maximum(y, 0.0)


if __name__ == "__main__":
    key = jax.random.PRNGKey(0)
    N, Cx, Hx, Wx = 2, 4, 8, 8        # low-res feature map
    Cs, Hs, Ws = 4, 16, 16            # skip connection feature map
    skip_input = Cx + Cs              # 8  (channels after concat)
    output_features = 8

    k1, k2, k3, k4, k5, k6 = jax.random.split(key, 6)
    x = jax.random.normal(k1, (N, Cx, Hx, Wx), jnp.float32)
    skip_x = jax.random.normal(k2, (N, Cs, Hs, Ws), jnp.float32)
    w = 0.1 * jax.random.normal(k3, (output_features, skip_input, 3, 3), jnp.float32)
    b = 0.1 * jax.random.normal(k4, (output_features,), jnp.float32)
    gamma = 1.0 + 0.1 * jax.random.normal(k5, (output_features,), jnp.float32)
    beta = 0.1 * jax.random.normal(k6, (output_features,), jnp.float32)

    out = jax.block_until_ready(upsample_bn(x, skip_x, w, b, gamma, beta))
    ref = jax.block_until_ready(upsample_bn_ref(x, skip_x, w, b, gamma, beta))

    assert out.shape == (N, output_features, Hs, Ws)
    # bf16 matmul operands (f32 accumulation) vs f32 reference -> bf16-level tolerance.
    np.testing.assert_allclose(np.asarray(out), np.asarray(ref), rtol=5e-2, atol=5e-2)
    print("KERNEL_OK")
</pallas_src>

<mosaic_0001>
module attributes {stable_mosaic.version = 11 : i64} {
  func.func @_resize_kernel(%arg0: i32, %arg1: memref<4x8x8xbf16, #tpu.memory_space<vmem>>, %arg2: memref<8x16xbf16, #tpu.memory_space<vmem>>, %arg3: memref<8x16xbf16, #tpu.memory_space<vmem>>, %arg4: memref<4x16x16xbf16, #tpu.memory_space<vmem>>) attributes {dimension_semantics = [#tpu.dimension_semantics<parallel>], iteration_bounds = array<i64: 2>, scalar_prefetch = 0 : i64, scratch_operands = 0 : i64, tpu.core_type = #tpu.core_type<tc>, window_params = [{transform_indices = @transform_0, window_bounds = array<i64: 4, 8, 8>}, {pipeline_mode = #tpu.pipeline_mode<synchronous>, transform_indices = @transform_1, window_bounds = array<i64: 8, 16>}, {pipeline_mode = #tpu.pipeline_mode<synchronous>, transform_indices = @transform_2, window_bounds = array<i64: 8, 16>}, {transform_indices = @transform_3, window_bounds = array<i64: 4, 16, 16>}]} {
    %c0 = arith.constant 0 : index
    %c0_0 = arith.constant 0 : index
    %c0_1 = arith.constant 0 : index
    %0 = vector.load %arg1[%c0, %c0_0, %c0_1] : memref<4x8x8xbf16, #tpu.memory_space<vmem>>, vector<4x8x8xbf16>
    %1 = vector.shape_cast %0 : vector<4x8x8xbf16> to vector<32x8xbf16>
    %c0_2 = arith.constant 0 : index
    %c0_3 = arith.constant 0 : index
    %2 = vector.load %arg2[%c0_2, %c0_3] : memref<8x16xbf16, #tpu.memory_space<vmem>>, vector<8x16xbf16>
    %cst = arith.constant dense<0.000000e+00> : vector<32x16xf32>
    %3 = tpu.matmul %1, %2, %cst {dimension_numbers = #tpu.dot_dimension_numbers<[1], [0], [0], [1], [0, 0, 1, 1], [], []>} : vector<32x8xbf16>, vector<8x16xbf16>, vector<32x16xf32> -> vector<32x16xf32>
    %4 = vector.shape_cast %3 : vector<32x16xf32> to vector<4x8x16xf32>
    %5 = vector.extract_strided_slice %4 {offsets = [0, 0, 0], sizes = [1, 8, 16], strides = [1, 1, 1]} : vector<4x8x16xf32> to vector<1x8x16xf32>
    %6 = vector.shape_cast %5 : vector<1x8x16xf32> to vector<8x16xf32>
    %7 = tpu.transpose %6, [1, 0] : vector<8x16xf32> -> vector<16x8xf32>
    %8 = vector.extract_strided_slice %4 {offsets = [1, 0, 0], sizes = [1, 8, 16], strides = [1, 1, 1]} : vector<4x8x16xf32> to vector<1x8x16xf32>
    %9 = vector.shape_cast %8 : vector<1x8x16xf32> to vector<8x16xf32>
    %10 = tpu.transpose %9, [1, 0] : vector<8x16xf32> -> vector<16x8xf32>
    %11 = vector.extract_strided_slice %4 {offsets = [2, 0, 0], sizes = [1, 8, 16], strides = [1, 1, 1]} : vector<4x8x16xf32> to vector<1x8x16xf32>
    %12 = vector.shape_cast %11 : vector<1x8x16xf32> to vector<8x16xf32>
    %13 = tpu.transpose %12, [1, 0] : vector<8x16xf32> -> vector<16x8xf32>
    %14 = vector.extract_strided_slice %4 {offsets = [3, 0, 0], sizes = [1, 8, 16], strides = [1, 1, 1]} : vector<4x8x16xf32> to vector<1x8x16xf32>
    %15 = vector.shape_cast %14 : vector<1x8x16xf32> to vector<8x16xf32>
    %16 = tpu.transpose %15, [1, 0] : vector<8x16xf32> -> vector<16x8xf32>
    %17 = vector.shape_cast %7 : vector<16x8xf32> to vector<1x16x8xf32>
    %18 = vector.shape_cast %10 : vector<16x8xf32> to vector<1x16x8xf32>
    %19 = vector.shape_cast %13 : vector<16x8xf32> to vector<1x16x8xf32>
    %20 = vector.shape_cast %16 : vector<16x8xf32> to vector<1x16x8xf32>
    %21 = tpu.concatenate %17, %18, %19, %20 in 0 : vector<1x16x8xf32>, vector<1x16x8xf32>, vector<1x16x8xf32>, vector<1x16x8xf32> -> vector<4x16x8xf32>
    %22 = vector.shape_cast %21 : vector<4x16x8xf32> to vector<64x8xf32>
    %23 = arith.truncf %22 : vector<64x8xf32> to vector<64x8xbf16>
    %c0_4 = arith.constant 0 : index
    %c0_5 = arith.constant 0 : index
    %24 = vector.load %arg3[%c0_4, %c0_5] : memref<8x16xbf16, #tpu.memory_space<vmem>>, vector<8x16xbf16>
    %cst_6 = arith.constant dense<0.000000e+00> : vector<64x16xf32>
    %25 = tpu.matmul %23, %24, %cst_6 {dimension_numbers = #tpu.dot_dimension_numbers<[1], [0], [0], [1], [0, 0, 1, 1], [], []>} : vector<64x8xbf16>, vector<8x16xbf16>, vector<64x16xf32> -> vector<64x16xf32>
    %26 = vector.shape_cast %25 : vector<64x16xf32> to vector<4x16x16xf32>
    %27 = arith.truncf %26 : vector<4x16x16xf32> to vector<4x16x16xbf16>
    %c0_7 = arith.constant 0 : index
    %c0_8 = arith.constant 0 : index
    %c0_9 = arith.constant 0 : index
    %28 = vector.load %arg4[%c0_7, %c0_8, %c0_9] : memref<4x16x16xbf16, #tpu.memory_space<vmem>>, vector<4x16x16xbf16>
    tpu.vector_store %arg4[%c0_7, %c0_8, %c0_9], %27 {strides = array<i32>} : memref<4x16x16xbf16, #tpu.memory_space<vmem>>, vector<4x16x16xbf16>,
    return
  }
  func.func @transform_0(%arg0: i32) -> (i32, i32, i32) {
    %c0_i32 = arith.constant 0 : i32
    %c0_i32_0 = arith.constant 0 : i32
    %c0_i32_1 = arith.constant 0 : i32
    return %arg0, %c0_i32, %c0_i32_0 : i32, i32, i32
  }
  func.func @transform_1(%arg0: i32) -> (i32, i32) {
    %c0_i32 = arith.constant 0 : i32
    %c0_i32_0 = arith.constant 0 : i32
    %c0_i32_1 = arith.constant 0 : i32
    return %c0_i32, %c0_i32_0 : i32, i32
  }
  func.func @transform_2(%arg0: i32) -> (i32, i32) {
    %c0_i32 = arith.constant 0 : i32
    %c0_i32_0 = arith.constant 0 : i32
    %c0_i32_1 = arith.constant 0 : i32
    return %c0_i32, %c0_i32_0 : i32, i32
  }
  func.func @transform_3(%arg0: i32) -> (i32, i32, i32) {
    %c0_i32 = arith.constant 0 : i32
    %c0_i32_0 = arith.constant 0 : i32
    %c0_i32_1 = arith.constant 0 : i32
    return %arg0, %c0_i32, %c0_i32_0 : i32, i32, i32
  }
}

module attributes {stable_mosaic.version = 11 : i64} {
  func.func @_conv_stats_kernel(%arg0: i32, %arg1: i32, %arg2: memref<1x16x16x8xbf16, #tpu.memory_space<vmem>>, %arg3: memref<1x1x16x8xbf16, #tpu.memory_space<vmem>>, %arg4: memref<1x1x16x8xbf16, #tpu.memory_space<vmem>>, %arg5: memref<72x128xbf16, #tpu.memory_space<vmem>>, %arg6: memref<1x128xf32, #tpu.memory_space<vmem>>, %arg7: memref<1x16x16x128xbf16, #tpu.memory_space<vmem>>, %arg8: memref<1x1x2x128xf32, #tpu.memory_space<vmem>>) attributes {dimension_semantics = [#tpu.dimension_semantics<parallel>, #tpu.dimension_semantics<parallel>], iteration_bounds = array<i64: 2, 1>, scalar_prefetch = 0 : i64, scratch_operands = 0 : i64, tpu.core_type = #tpu.core_type<tc>, window_params = [{transform_indices = @transform_0, window_bounds = array<i64: 1, 16, 16, 8>}, {transform_indices = @transform_1, window_bounds = array<i64: 1, 1, 16, 8>}, {transform_indices = @transform_2, window_bounds = array<i64: 1, 1, 16, 8>}, {pipeline_mode = #tpu.pipeline_mode<synchronous>, transform_indices = @transform_3, window_bounds = array<i64: 72, 128>}, {pipeline_mode = #tpu.pipeline_mode<synchronous>, transform_indices = @transform_4, window_bounds = array<i64: 1, 128>}, {transform_indices = @transform_5, window_bounds = array<i64: 1, 16, 16, 128>}, {transform_indices = @transform_6, window_bounds = array<i64: 1, 1, 2, 128>}]} {
    %c0 = arith.constant 0 : index
    %c0_0 = arith.constant 0 : index
    %c0_1 = arith.constant 0 : index
    %c0_2 = arith.constant 0 : index
    %0 = vector.load %arg2[%c0, %c0_0, %c0_1, %c0_2] : memref<1x16x16x8xbf16, #tpu.memory_space<vmem>>, vector<1x16x16x8xbf16>
    %1 = vector.shape_cast %0 : vector<1x16x16x8xbf16> to vector<16x16x8xbf16>
    %c0_3 = arith.constant 0 : index
    %c0_4 = arith.constant 0 : index
    %c0_5 = arith.constant 0 : index
    %c0_6 = arith.constant 0 : index
    %2 = vector.load %arg3[%c0_3, %c0_4, %c0_5, %c0_6] : memref<1x1x16x8xbf16, #tpu.memory_space<vmem>>, vector<1x1x16x8xbf16>
    %3 = vector.shape_cast %2 : vector<1x1x16x8xbf16> to vector<1x16x8xbf16>
    %c0_i32 = arith.constant 0 : i32
    %4 = arith.cmpi eq, %arg1, %c0_i32 : i32
    %cst = arith.constant 0.000000e+00 : f32
    %cst_7 = arith.constant 1.000000e+00 : f32
    %5 = arith.select %4, %cst, %cst_7 : f32
    %6 = arith.truncf %5 : f32 to bf16
    %7 = vector.broadcast %6 : bf16 to vector<1x16x8xbf16>
    %8 = arith.mulf %3, %7 : vector<1x16x8xbf16>
    %c0_8 = arith.constant 0 : index
    %c0_9 = arith.constant 0 : index
    %c0_10 = arith.constant 0 : index
    %c0_11 = arith.constant 0 : index
    %9 = vector.load %arg4[%c0_8, %c0_9, %c0_10, %c0_11] : memref<1x1x16x8xbf16, #tpu.memory_space<vmem>>, vector<1x1x16x8xbf16>
    %10 = vector.shape_cast %9 : vector<1x1x16x8xbf16> to vector<1x16x8xbf16>
    %c0_i32_12 = arith.constant 0 : i32
    %11 = arith.cmpi eq, %arg1, %c0_i32_12 : i32
    %cst_13 = arith.constant 0.000000e+00 : f32
    %cst_14 = arith.constant 1.000000e+00 : f32
    %12 = arith.select %11, %cst_13, %cst_14 : f32
    %13 = arith.truncf %12 : f32 to bf16
    %14 = vector.broadcast %13 : bf16 to vector<1x16x8xbf16>
    %15 = arith.mulf %10, %14 : vector<1x16x8xbf16>
    %16 = tpu.concatenate %8, %1, %15 in 0 : vector<1x16x8xbf16>, vector<16x16x8xbf16>, vector<1x16x8xbf16> -> vector<18x16x8xbf16>
    %cst_15 = arith.constant 0.000000e+00 : bf16
    %17 = vector.broadcast %cst_15 : bf16 to vector<18x1x8xbf16>
    %18 = tpu.concatenate %17, %16, %17 in 1 : vector<18x1x8xbf16>, vector<18x16x8xbf16>, vector<18x1x8xbf16> -> vector<18x18x8xbf16>
    %19 = vector.extract_strided_slice %18 {offsets = [0, 0, 0], sizes = [16, 16, 8], strides = [1, 1, 1]} : vector<18x18x8xbf16> to vector<16x16x8xbf16>
    %20 = vector.extract_strided_slice %18 {offsets = [0, 1, 0], sizes = [16, 16, 8], strides = [1, 1, 1]} : vector<18x18x8xbf16> to vector<16x16x8xbf16>
    %21 = vector.extract_strided_slice %18 {offsets = [0, 2, 0], sizes = [16, 16, 8], strides = [1, 1, 1]} : vector<18x18x8xbf16> to vector<16x16x8xbf16>
    %22 = vector.extract_strided_slice %18 {offsets = [1, 0, 0], sizes = [16, 16, 8], strides = [1, 1, 1]} : vector<18x18x8xbf16> to vector<16x16x8xbf16>
    %23 = vector.extract_strided_slice %18 {offsets = [1, 1, 0], sizes = [16, 16, 8], strides = [1, 1, 1]} : vector<18x18x8xbf16> to vector<16x16x8xbf16>
    %24 = vector.extract_strided_slice %18 {offsets = [1, 2, 0], sizes = [16, 16, 8], strides = [1, 1, 1]} : vector<18x18x8xbf16> to vector<16x16x8xbf16>
    %25 = vector.extract_strided_slice %18 {offsets = [2, 0, 0], sizes = [16, 16, 8], strides = [1, 1, 1]} : vector<18x18x8xbf16> to vector<16x16x8xbf16>
    %26 = vector.extract_strided_slice %18 {offsets = [2, 1, 0], sizes = [16, 16, 8], strides = [1, 1, 1]} : vector<18x18x8xbf16> to vector<16x16x8xbf16>
    %27 = vector.extract_strided_slice %18 {offsets = [2, 2, 0], sizes = [16, 16, 8], strides = [1, 1, 1]} : vector<18x18x8xbf16> to vector<16x16x8xbf16>
    %28 = tpu.concatenate %19, %20, %21, %22, %23, %24, %25, %26, %27 in 2 : vector<16x16x8xbf16>, vector<16x16x8xbf16>, vector<16x16x8xbf16>, vector<16x16x8xbf16>, vector<16x16x8xbf16>, vector<16x16x8xbf16>, vector<16x16x8xbf16>, vector<16x16x8xbf16>, vector<16x16x8xbf16> -> vector<16x16x72xbf16>
    %29 = vector.shape_cast %28 : vector<16x16x72xbf16> to vector<256x72xbf16>
    %c0_16 = arith.constant 0 : index
    %c0_17 = arith.constant 0 : index
    %30 = vector.load %arg5[%c0_16, %c0_17] : memref<72x128xbf16, #tpu.memory_space<vmem>>, vector<72x128xbf16>
    %cst_18 = arith.constant dense<0.000000e+00> : vector<256x128xf32>
    %31 = tpu.matmul %29, %30, %cst_18 {dimension_numbers = #tpu.dot_dimension_numbers<[1], [0], [0], [1], [0, 0, 1, 1], [], []>} : vector<256x72xbf16>, vector<72x128xbf16>, vector<256x128xf32> -> vector<256x128xf32>
    %c0_19 = arith.constant 0 : index
    %c0_20 = arith.constant 0 : index
    %32 = vector.load %arg6[%c0_19, %c0_20] : memref<1x128xf32, #tpu.memory_space<vmem>>, vector<1x128xf32>
    %33 = vector.broadcast %32 : vector<1x128xf32> to vector<256x128xf32>
    %34 = arith.addf %31, %33 : vector<256x128xf32>
    %35 = vector.shape_cast %34 : vector<256x128xf32> to vector<16x16x128xf32>
    %36 = arith.truncf %35 : vector<16x16x128xf32> to vector<16x16x128xbf16>
    %c0_21 = arith.constant 0 : index
    %c0_22 = arith.constant 0 : index
    %c0_23 = arith.constant 0 : index
    %c0_24 = arith.constant 0 : index
    %37 = vector.load %arg7[%c0_21, %c0_22, %c0_23, %c0_24] : memref<1x16x16x128xbf16, #tpu.memory_space<vmem>>, vector<1x16x16x128xbf16>
    %38 = vector.shape_cast %37 : vector<1x16x16x128xbf16> to vector<16x16x128xbf16>
    %39 = vector.shape_cast %36 : vector<16x16x128xbf16> to vector<1x16x16x128xbf16>
    tpu.vector_store %arg7[%c0_21, %c0_22, %c0_23, %c0_24], %39 {strides = array<i32>} : memref<1x16x16x128xbf16, #tpu.memory_space<vmem>>, vector<1x16x16x128xbf16>,
    %cst_25 = arith.constant dense<0.000000e+00> : vector<128xf32>
    %40 = vector.multi_reduction <add>, %34, %cst_25 [0] : vector<256x128xf32> to vector<128xf32>
    %41 = vector.shape_cast %40 : vector<128xf32> to vector<1x128xf32>
    %cst_26 = arith.constant 3.906250e-03 : f32
    %42 = vector.broadcast %cst_26 : f32 to vector<1x128xf32>
    %43 = arith.mulf %41, %42 : vector<1x128xf32>
    %44 = vector.broadcast %43 : vector<1x128xf32> to vector<256x128xf32>
    %45 = arith.subf %34, %44 : vector<256x128xf32>
    %46 = arith.mulf %45, %45 : vector<256x128xf32>
    %cst_27 = arith.constant dense<0.000000e+00> : vector<128xf32>
    %47 = vector.multi_reduction <add>, %46, %cst_27 [0] : vector<256x128xf32> to vector<128xf32>
    %48 = vector.shape_cast %47 : vector<128xf32> to vector<1x128xf32>
    %49 = tpu.concatenate %41, %48 in 0 : vector<1x128xf32>, vector<1x128xf32> -> vector<2x128xf32>
    %c0_28 = arith.constant 0 : index
    %c0_29 = arith.constant 0 : index
    %c0_30 = arith.constant 0 : index
    %c0_31 = arith.constant 0 : index
    %50 = vector.load %arg8[%c0_28, %c0_29, %c0_30, %c0_31] : memref<1x1x2x128xf32, #tpu.memory_space<vmem>>, vector<1x1x2x128xf32>
    %51 = vector.shape_cast %50 : vector<1x1x2x128xf32> to vector<2x128xf32>
    %52 = vector.shape_cast %49 : vector<2x128xf32> to vector<1x1x2x128xf32>
    tpu.vector_store %arg8[%c0_28, %c0_29, %c0_30, %c0_31], %52 {strides = array<i32>} : memref<1x1x2x128xf32, #tpu.memory_space<vmem>>, vector<1x1x2x128xf32>,
    return
  }
  func.func @transform_0(%arg0: i32, %arg1: i32) -> (i32, i32, i32, i32) {
    %c0_i32 = arith.constant 0 : i32
    %c0_i32_0 = arith.constant 0 : i32
    %c0_i32_1 = arith.constant 0 : i32
    return %arg0, %arg1, %c0_i32, %c0_i32_0 : i32, i32, i32, i32
  }
  func.func @transform_1(%arg0: i32, %arg1: i32) -> (i32, i32, i32, i32) {
    %c16_i32 = arith.constant 16 : i32
    %0 = arith.muli %arg1, %c16_i32 : i32
    %c1_i32 = arith.constant 1 : i32
    %1 = arith.subi %0, %c1_i32 : i32
    %c0_i32 = arith.constant 0 : i32
    %2 = arith.maxsi %1, %c0_i32 : i32
    %c0_i32_0 = arith.constant 0 : i32
    %c0_i32_1 = arith.constant 0 : i32
    %c0_i32_2 = arith.constant 0 : i32
    return %arg0, %2, %c0_i32_0, %c0_i32_1 : i32, i32, i32, i32
  }
  func.func @transform_2(%arg0: i32, %arg1: i32) -> (i32, i32, i32, i32) {
    %c1_i32 = arith.constant 1 : i32
    %0 = arith.addi %arg1, %c1_i32 : i32
    %c16_i32 = arith.constant 16 : i32
    %1 = arith.muli %0, %c16_i32 : i32
    %c15_i32 = arith.constant 15 : i32
    %2 = arith.minsi %1, %c15_i32 : i32
    %c0_i32 = arith.constant 0 : i32
    %c0_i32_0 = arith.constant 0 : i32
    %c0_i32_1 = arith.constant 0 : i32
    return %arg0, %2, %c0_i32, %c0_i32_0 : i32, i32, i32, i32
  }
  func.func @transform_3(%arg0: i32, %arg1: i32) -> (i32, i32) {
    %c0_i32 = arith.constant 0 : i32
    %c0_i32_0 = arith.constant 0 : i32
    %c0_i32_1 = arith.constant 0 : i32
    return %c0_i32, %c0_i32_0 : i32, i32
  }
  func.func @transform_4(%arg0: i32, %arg1: i32) -> (i32, i32) {
    %c0_i32 = arith.constant 0 : i32
    %c0_i32_0 = arith.constant 0 : i32
    %c0_i32_1 = arith.constant 0 : i32
    return %c0_i32, %c0_i32_0 : i32, i32
  }
  func.func @transform_5(%arg0: i32, %arg1: i32) -> (i32, i32, i32, i32) {
    %c0_i32 = arith.constant 0 : i32
    %c0_i32_0 = arith.constant 0 : i32
    %c0_i32_1 = arith.constant 0 : i32
    return %arg0, %arg1, %c0_i32, %c0_i32_0 : i32, i32, i32, i32
  }
  func.func @transform_6(%arg0: i32, %arg1: i32) -> (i32, i32, i32, i32) {
    %c0_i32 = arith.constant 0 : i32
    %c0_i32_0 = arith.constant 0 : i32
    %c0_i32_1 = arith.constant 0 : i32
    return %arg0, %arg1, %c0_i32, %c0_i32_0 : i32, i32, i32, i32
  }
}

</mosaic_0001>

<bundles_post_ra>
// kernel: upsample_bn.2
= control target key start
LH: loop header
LB: loop body
LE: loop exit
PB: predicated region body
PF: predicated region fallthrough
CT: control target
= control target key end

     0   :  { %s690_s12 = smov 0   ;;  %s735_s0 = inlined_call_operand.vmem [shape: bf16[8,8,8], index: 0, kind: input, shape index: {}]   ;;  %s736_s1 = inlined_call_operand.vmem [shape: bf16[8,16], index: 1, kind: input, shape index: {}, may-alias: {1,2}]   ;;  %s737_s2 = inlined_call_operand.vmem [shape: bf16[8,16], index: 2, kind: input, shape index: {}, may-alias: {1,2}]   ;;  %s738_s3 = inlined_call_operand.vmem [shape: bf16[8,16,16], index: 3, kind: output, shape index: {}]  }
   0x1 LB: > { %s564_s13 = sadd.s32 4294967295, %s668_s12   ;;  %p568_p0 = scmp.ge.s32.totalorder %s668_s12, 1  ;;  %s668_s12 = sphi %s690_s12, %s13_s12  }
   0x2   : > { %p138_p1 = scmp.lt.s32.totalorder %s668_s12, 3 }
   0x4   : > { %p139_p2 = pnand %p568_p0, %p138_p1 }
   0x5   : > { %v181_v0 = vld [vmem:[%s736_s1] sm:$0xf] (!%p139_p2)  ;;  %vm199_vm0 = vcmask (!%p139_p2), 1043456   ;;  %s569_s16 = sshll.u32 (!%p139_p2), %s564_s13, 2  ;;  %vm192_vm1 = vcmask (!%p139_p2), 64512   ;;  %vm497_vm2 = vcmask (!%p139_p2), 125952  }
   0x6   : > { %142 = sbr.rel (%p139_p2) target bundleno = 599 (0x257), region = 32  ;;  %625 = vmatprep.subr.msk.bf16.mxu0 (!%p139_p2), %vm199_vm0, %v181_v0  ;;  %v201_v1 = vsel (!%p139_p2), %vm199_vm0, %v181_v0, 0  ;;  %p164_p3 = scmp.lt.s32.totalorder (!%p139_p2), %s569_s16, 7  ;;  %v384_v10 = vld [vmem:[%s737_s2] sm:$0xf] (!%p139_p2) }
   0x7   : > { %610 = vmatpush3.bf16.msra.mxu0 (!%p139_p2), %v201_v1  ;;  %626 = vmatprep.subr.msk.bf16.mxu1 (!%p139_p2), %vm199_vm0, %v384_v10  ;;  %v398_v11 = vsel (!%p139_p2), %vm199_vm0, %v384_v10, 0 }
   0x8   : > { %616 = vmatpush3.bf16.msra.mxu1 (!%p139_p2), %v398_v11 }
   0xd   : > { %s740_s16 = smov (!%p164_p3, %s569_s16), 7 }
   0xe   : > { %s570_s17 = sshll.u32 %s740_s16, 2  ;;  %s592_s23 = sshll.u32 %s740_s16, 3 }
   0xf   : > { %s167_s20 = scalar_lea.vmem %s735_s0, %s570_s17  ;;  %s174_s26 = scalar_lea.vmem %s738_s3, %s592_s23 }
  0x10   : > { %v660_v2 = vld [vmem:[%s167_s20] sm:$0xff]   ;;  %v661_v3 = vld [vmem:[%s167_s20 + $0x8] sm:$0xff]  }
  0x11   : > { %611 = vmatprep.mubr.msk.bf16.mxu0 %vm192_vm1, %v660_v2 }
  0x12   : > { %612 = vmatmul.mubr.msk.bf16.vlgmr.msra.gmra.mrb[0].mxu0 %vm192_vm1, %v661_v3 }
  0xe5   : > { %v613_v4 = vpop.f32.mrb[0].mxu0 }
  0xe6   : > { %v237_v5 = vpop.f32.mrb[1].mxu0 }
  0xe7   : > { %v614_v6 = vpop.f32.mrb[2].mxu0 }
  0xe8   : > { %v648_v7 = vpack.i.bf16 %v614_v6, %v613_v4  ;;  %v240_v8 = vpop.f32.mrb[3].mxu0 }
  0xe9   : > { %v636_v9 = vpack.i.bf16 %v240_v8, %v237_v5 }
  0xeb   : > { %637 = vxpose.xlu0.b32.start.end [1/1] (short) (narrow) %v636_v9, 16 }
  0xf0   : > { %649 = vxpose.xlu0.b32.start.end [1/1] (short) (narrow) %v648_v7, 16 }
 0x16b   : > { %v638_v12 = vpop.trf.xlu0 }
 0x16c   : > { %v642_v13 = vunpack.i.h.bf16 %v638_v12  ;;  %v639_v15 = vunpack.i.l.bf16 %v638_v12 }
 0x16f   : > { %v643_v14 = vpop.trf.xlu0 }
 0x170   : > { %v647_v16 = vunpack.i.h.bf16 %v643_v14  ;;  %v644_v17 = vunpack.i.l.bf16 %v643_v14 }
 0x172   : > { %v380_v18 = vpack.c.bf16 %v644_v17, %v639_v15  ;;  %v381_v19 = vpack.c.bf16 %v647_v16, %v642_v13 }
 0x173   : > { %v650_v20 = vpop.trf.xlu0 }
 0x174   : > { %617 = vmatprep.mubr.msk.bf16.mxu1 %vm192_vm1, %v380_v18  ;;  %v654_v21 = vunpack.i.h.bf16 %v650_v20  ;;  %v651_v22 = vunpack.i.l.bf16 %v650_v20 }
 0x175   : > { %618 = vmatmul.mubr.msk.bf16.vlgmr.msra.gmra.mrb[0].mxu1 %vm192_vm1, %v381_v19 }
 0x177   : > { %v655_v23 = vpop.trf.xlu0 }
 0x178   : > { %v659_v24 = vunpack.i.h.bf16 %v655_v23  ;;  %v656_v25 = vunpack.i.l.bf16 %v655_v23 }
 0x17a   : > { %v382_v26 = vpack.c.bf16 %v656_v25, %v651_v22  ;;  %v383_v27 = vpack.c.bf16 %v659_v24, %v654_v21 }
 0x17c   : > { %621 = vmatprep.mubr.msk.bf16.mxu1 %vm192_vm1, %v382_v26 }
 0x17d   : > { %622 = vmatmul.mubr.msk.bf16.gmra.mrb[4].mxu1 %vm192_vm1, %v383_v27 }
 0x248   : > { %v619_v28 = vpop.f32.mrb[0].mxu1 }
 0x249   : > { %v434_v29 = vpop.f32.mrb[1].mxu1  ;;  %v595_v32 = vpack.c.bf16 %v619_v28, %v619_v28 }
 0x24a   : > { %v593_v30 = vpack.c.bf16 %v434_v29, %v434_v29  ;;  %v620_v31 = vpop.f32.mrb[2].mxu1 }
 0x24b   : > { %v437_v33 = vpop.f32.mrb[3].mxu1  ;;  %500 = vst.msk [vmem:[%s174_s26 + $0x8] sm:$0xf] %vm497_vm2, %v595_v32  ;;  %v596_v35 = vpack.c.bf16 %v620_v31, %v620_v31 }
 0x24c   : > { %498 = vst.msk [vmem:[%s174_s26] sm:$0xf] %vm497_vm2, %v593_v30  ;;  %v594_v34 = vpack.c.bf16 %v437_v33, %v437_v33 }
 0x24d   : > { %501 = vst.msk [vmem:[%s174_s26 + $0xc] sm:$0xf] %vm497_vm2, %v596_v35 }
 0x24e   : > { %499 = vst.msk [vmem:[%s174_s26 + $0x4] sm:$0xf] %vm497_vm2, %v594_v34 }
 0x250   : > { %v623_v36 = vpop.f32.mrb[4].mxu1 }
 0x251   : > { %v450_v37 = vpop.f32.mrb[5].mxu1  ;;  %v599_v40 = vpack.c.bf16 %v623_v36, %v623_v36 }
 0x252   : > { %v597_v38 = vpack.c.bf16 %v450_v37, %v450_v37  ;;  %v624_v39 = vpop.f32.mrb[6].mxu1 }
 0x253   : > { %v453_v41 = vpop.f32.mrb[7].mxu1  ;;  %504 = vst.msk [vmem:[%s174_s26 + $0x18] sm:$0xf] %vm497_vm2, %v599_v40  ;;  %v600_v43 = vpack.c.bf16 %v624_v39, %v624_v39 }
 0x254   : > { %502 = vst.msk [vmem:[%s174_s26 + $0x10] sm:$0xf] %vm497_vm2, %v597_v38  ;;  %v598_v42 = vpack.c.bf16 %v453_v41, %v453_v41 }
 0x255   : > { %505 = vst.msk [vmem:[%s174_s26 + $0x1c] sm:$0xf] %vm497_vm2, %v600_v43 }
 0x256   : > { %503 = vst.msk [vmem:[%s174_s26 + $0x14] sm:$0xf] %vm497_vm2, %v598_v42 }
 0x257 PF: > { %s13_s12 = sadd.s32 1, %s668_s12  }
 0x258   : > { %p10_p4 = scmp.ge.s32.totalorder %s13_s12, 4  }
 0x25a   :  { %12 = sbr.rel (!%p10_p4) target bundleno = 1 (0x1), region = 62 }

// kernel: upsample_bn.3
= control target key start
LH: loop header
LB: loop body
LE: loop exit
PB: predicated region body
PF: predicated region fallthrough
CT: control target
= control target key end

     0   :  { %s2753_s21 = smov 0   ;;  %s2755_s22 = smov 0   ;;  %s3663_s0 = inlined_call_operand.vmem [shape: bf16[2,16,16,8], index: 0, kind: input, shape index: {}, may-alias: {0,1,2}]   ;;  %s3664_s1 = inlined_call_operand.vmem [shape: bf16[2,16,16,8], index: 1, kind: input, shape index: {}, may-alias: {0,1,2}]   ;;  %s3665_s2 = inlined_call_operand.vmem [shape: bf16[2,16,16,8], index: 2, kind: input, shape index: {}, may-alias: {0,1,2}]   ;;  %s3666_s3 = inlined_call_operand.vmem [shape: bf16[72,128], index: 3, kind: input, shape index: {}]   ;;  %s3667_s4 = inlined_call_operand.vmem [shape: f32[1,128], index: 4, kind: input, shape index: {}]   ;;  %s3668_s5 = inlined_call_operand.vmem [shape: bf16[2,16,16,128], index: 5, kind: output, shape index: {0}]   ;;  %s3669_s6 = inlined_call_operand.vmem [shape: f32[2,1,2,128], index: 6, kind: output, shape index: {1}]  }
   0x1   :  { %s2757_s23 = smov 0  }
   0x2 LB: > { %s29_s24 = sadd.s32 1, %s2704_s22  ;;  %p2341_p0 = scmp.ge.s32.totalorder %s2708_s23, 1  ;;  %s2708_s23 = sphi %s2757_s23, %s17_s23   ;;  %s2704_s22 = sphi %s2755_s22, %s3673_s22   ;;  %s2700_s21 = sphi %s2753_s21, %s3672_s21  }
   0x3   : > { %p31_p1 = scmp.ge.s32.totalorder %s29_s24, 2  ;;  %p303_p2 = scmp.lt.s32.totalorder %s2708_s23, 3 }
   0x5   : > { %s3675_s24 = smov (%p31_p1, %s29_s24), 0  ;;  %p304_p3 = pnand %p2341_p0, %p303_p2 }
   0x6   : > { %p377_p4 = scmp.lt.s32.totalorder (!%p304_p3), %s2700_s21, 1  ;;  %vm749_vm0 = vsmask.f32 (!%p304_p3), 256  ;;  %vm748_vm1 = vcmask (!%p304_p3), 1040384   ;;  %s2710_s8 = smov (!%p304_p3), 24   ;;  %vm1044_vm3 = vcmask (!%p304_p3), 1046528  }
   0x7   : > { %307 = sbr.rel (%p304_p3) target bundleno = 712 (0x2c8), region = 40  ;;  %vm2790_vm2 = vmand (!%p304_p3), %vm748_vm1, %vm749_vm0  ;;  %v2674_v34 = vld [vmem:[%s3666_s3] sm:$0xff] (!%p304_p3)   ;;  %s2711_s11 = smov (!%p304_p3), 48   ;;  %v2675_v40 = vld [vmem:[%s3666_s3 + $0x8] sm:$0xff] (!%p304_p3)   ;;  %vm787_vm4 = vsmask.f32 (!%p304_p3), 7424 }
   0x8   : > { %2579 = vmatprep.subr.bf16.mxu0 (!%p304_p3), %v2674_v34  ;;  %2621 = vmatprep.subr.bf16.mxu1 (!%p304_p3), %v2674_v34  ;;  %v2676_v45 = vld [vmem:[%s3666_s3 + $0x10] sm:$0xff] (!%p304_p3)   ;;  %s2712_s16 = smov (!%p304_p3), 16   ;;  %s2713_s17 = smov (!%p304_p3), 40   ;;  %v2678_v58 = vld [vmem:[%s3666_s3 + $0x18] sm:$0xff] (!%p304_p3)   ;;  %vm1691_vm5 = vcmask (!%p304_p3), 1043456   ;;  %vm1351_vm6 = vcmask (!%p304_p3), 64512  }
   0x9   : > { %2580 = vmatpush3.bf16.msra.mxu0 (!%p304_p3), %v2674_v34  ;;  %2626 = vmatpush3.bf16.msra.mxu1 (!%p304_p3), %v2674_v34  ;;  %s2714_s20 = smov (!%p304_p3), 8   ;;  %s2715_s26 = smov (!%p304_p3), 32   ;;  %vm1384_vm7 = vcmask (!%p304_p3), 130048   ;;  %vm1417_vm8 = vcmask (!%p304_p3), 195584   ;;  %vm1450_vm9 = vcmask (!%p304_p3), 261120   ;;  %vm1483_vm10 = vcmask (!%p304_p3), 326656  }
   0xa   : > { %2581 = vmatprep.subr.bf16.mxu0 (!%p304_p3), %v2675_v40  ;;  %2622 = vmatprep.subr.bf16.mxu1 (!%p304_p3), %v2675_v40  ;;  %s2716_s27 = smov (!%p304_p3), 56   ;;  %s2717_s29 = smov (!%p304_p3), 64   ;;  %vm1516_vm11 = vcmask (!%p304_p3), 392192   ;;  %vm1549_vm12 = vcmask (!%p304_p3), 457728   ;;  %vm1582_vm13 = vcmask (!%p304_p3), 523264   ;;  %vm1658_vm14 = vcmask (!%p304_p3), 588800  }
   0xd   : > { %2582 = vmatpush3.bf16.msra.mxu0 (!%p304_p3), %v2675_v40  ;;  %2627 = vmatpush3.bf16.msra.mxu1 (!%p304_p3), %v2675_v40 }
   0xe   : > { %s3677_s21 = smov (!%p377_p4, %s2700_s21), 1  ;;  %2583 = vmatprep.subr.bf16.mxu0 %v2676_v45  ;;  %2623 = vmatprep.subr.bf16.mxu1 %v2676_v45 }
   0xf   : > { %s2774_s25 = sshll.u32 %s3677_s21, 7 }
  0x10   : > { %s2780_s28 = scalar_lea.vmem %s3663_s0, %s2774_s25  ;;  %s399_s7 = scalar_lea.vmem %s3664_s1, %s2774_s25 }
  0x11   : > { %v2665_v0 = vld [vmem:[%s2780_s28 + $0x8] sm:$0xff]   ;;  %v2666_v1 = vld [vmem:[%s2780_s28] sm:$0xff]   ;;  %v2667_v6 = vld [vmem:[%s2780_s28 + $0x10] sm:$0xff]   ;;  %2584 = vmatpush3.bf16.msra.mxu0 %v2676_v45  ;;  %2628 = vmatpush3.bf16.msra.mxu1 %v2676_v45  ;;  %s2428_s9 = sadd.s32 120, %s2774_s25  ;;  %s3401_s15 = scalar_lea.vmem %s3668_s5, %s2774_s25 }
  0x12   : > { %v601_v2 = vshrl.u32 %v2665_v0, 16  ;;  %v604_v3 = vshll.u32 %v2665_v0, 16  ;;  %v594_v4 = vshrl.u32 %v2666_v1, 16  ;;  %v597_v5 = vshll.u32 %v2666_v1, 16  ;;  %v472_v7 = vld [vmem:[%s399_s7] sm:$0xf]  ;;  %2585 = vmatprep.subr.bf16.mxu0 %v2678_v58  ;;  %2624 = vmatprep.subr.bf16.mxu1 %v2678_v58  ;;  %s416_s12 = scalar_lea.vmem %s3665_s2, %s2428_s9 }
  0x13   : > { %v473_v9 = vld [vmem:[%s399_s7 + $0x4] sm:$0xf]  ;;  %v490_v10 = vmul.bf16 0.0, %v472_v7  ;;  %v608_v13 = vshrl.u32 %v2667_v6, 16  ;;  %v611_v14 = vshll.u32 %v2667_v6, 16  ;;  %v2668_v50 = vld [vmem:[%s2780_s28 + $0x18] sm:$0xff]  }
  0x14   : > { %v603_v8 = vrot.slane %v601_v2, 7  ;;  %v596_v12 = vrot.slane %v594_v4, 7  ;;  %v491_v15 = vmul.bf16 0.0, %v473_v9  ;;  %v615_v4 = vshrl.u32 %v2668_v50, 16  ;;  %s2350_s25 = sshll.u32 %s3677_s21, 1 }
  0x15   : > { %v610_v18 = vrot.slane %v608_v13, 7  ;;  %2586 = vmatpush3.bf16.msra.mxu0 %v2678_v58  ;;  %2629 = vmatpush3.bf16.msra.mxu1 %v2678_v58  ;;  %s438_s18 = scalar_lea.vmem %s3669_s6, %s2350_s25 }
  0x16   : > { %v606_v16 = vor.u32 %v604_v3, %v603_v8  ;;  %v599_v17 = vor.u32 %v597_v5, %v596_v12  ;;  %v770_v19 = vsel %vm2790_vm2, %v596_v12, 0  ;;  %v2351_v21 = vcombine.low %v490_v10, %v491_v15 }
  0x17   : > { %v613_v23 = vor.u32 %v611_v14, %v610_v18  ;;  %v771_v24 = vsel %vm2790_vm2, %v603_v8, 0  ;;  %v1049_v26 = vrot.slane %v770_v19, 1  ;;  %v808_v28 = vshll.u32 %v770_v19, 16 }
  0x18   : > { %v2798_v20 = vsel %vm2790_vm2, 0, %v606_v16  ;;  %v2804_v22 = vsel %vm2790_vm2, 0, %v599_v17  ;;  %v587_v31 = vshrl.u32 %v2351_v21, 16  ;;  %v590_v32 = vshll.u32 %v2351_v21, 16  ;;  %v2669_v16 = vld [vmem:[%s2780_s28 + $0x20] sm:$0xff]  }
  0x19   : > { %1128 = vrot.lane.b32.xlu1 %v2798_v20, %s2710_s8  ;;  %1126 = vrot.lane.b32.xlu0 %v2804_v22, %s2710_s8  ;;  %v1048_v25 = vrot.slane %v2804_v22, 1  ;;  %v803_v27 = vshll.u32 %v2804_v22, 16  ;;  %v2814_v29 = vsel %vm2790_vm2, 0, %v613_v23  ;;  %v801_v30 = vshrl.u32 %v2804_v22, 16 }
  0x1a   : > { %v1051_v35 = vrot.slane %v2798_v20, 1  ;;  %v1052_v36 = vrot.slane %v771_v24, 1  ;;  %v589_v37 = vrot.slane %v587_v31, 7  ;;  %v815_v39 = vshll.u32 %v2798_v20, 16 }
  0x1b   : > { %v805_v33 = vrot.slane %v803_v27, 1  ;;  %v1050_v38 = vsel %vm1044_vm3, %v1048_v25, %v1049_v26  ;;  %v810_v42 = vrot.slane %v808_v28, 1  ;;  %v813_v48 = vshrl.u32 %v2798_v20, 16 }
  0x1c   : > { %v592_v43 = vor.u32 %v590_v32, %v589_v37  ;;  %v769_v44 = vsel %vm2790_vm2, %v589_v37, 0  ;;  %v2837_v46 = vsel %vm1044_vm3, %v1051_v35, %v1052_v36  ;;  %v820_v49 = vshll.u32 %v771_v24, 16 }
  0x1d   : > { %1241 = vrot.lane.b32.xlu1 %v2814_v29, %s2711_s11  ;;  %1239 = vrot.lane.b32.xlu0 %v2798_v20, %s2711_s11  ;;  %v806_v41 = vor.u32 %v805_v33, %v801_v30  ;;  %v1046_v52 = vrot.slane %v769_v44, 1  ;;  %v817_v53 = vrot.slane %v815_v39, 1  ;;  %v827_v54 = vshll.u32 %v2814_v29, 16  ;;  %v2679_v33 = vld [vmem:[%s3666_s3 + $0x20] ss:$0 sps:$4 sm:$0xff]  }
  0x1e   : > { %v2841_v47 = vsel %vm2790_vm2, 0, %v592_v43  ;;  %v772_v56 = vsel %vm2790_vm2, %v610_v18, 0  ;;  %v822_v59 = vrot.slane %v820_v49, 1  ;;  %v825_v60 = vshrl.u32 %v2814_v29, 16  ;;  %2631 = vmatprep.subr.msk.bf16.mxu0 %vm1691_vm5, %v2679_v33  ;;  %2632 = vmatprep.subr.msk.bf16.mxu1 %vm1691_vm5, %v2679_v33  ;;  %v2670_v43 = vld [vmem:[%s2780_s28 + $0x28] sm:$0xff]  }
  0x1f   : > { %v1045_v51 = vrot.slane %v2841_v47, 1  ;;  %v811_v55 = vsel %vm787_vm4, %v806_v41, %v810_v42  ;;  %v791_v57 = vshll.u32 %v2841_v47, 16  ;;  %v818_v62 = vor.u32 %v817_v53, %v813_v48 }
  0x20   : > { %v829_v63 = vrot.slane %v827_v54, 1  ;;  %v832_v0 = vshll.u32 %v772_v56, 16  ;;  %v789_v1 = vshrl.u32 %v2841_v47, 16  ;;  %v796_v3 = vshll.u32 %v769_v44, 16 }
  0x21   : > { %1095 = vrot.lane.b32.xlu1 %v1050_v38, %s2712_s16  ;;  %1206 = vrot.lane.b32.xlu0 %v1050_v38, %s2713_s17  ;;  %v1047_v61 = vsel %vm1044_vm3, %v1045_v51, %v1046_v52  ;;  %v793_v2 = vrot.slane %v791_v57, 1  ;;  %v823_v5 = vsel %vm787_vm4, %v818_v62, %v822_v59  ;;  %v617_v10 = vrot.slane %v615_v4, 7 }
  0x22   : > { %v830_v6 = vor.u32 %v829_v63, %v825_v60  ;;  %v834_v7 = vrot.slane %v832_v0, 1  ;;  %v798_v9 = vrot.slane %v796_v3, 1  ;;  %v618_v12 = vshll.u32 %v2668_v50, 16 }
  0x23   : > { %v794_v8 = vor.u32 %v793_v2, %v789_v1  ;;  %v1054_v17 = vrot.slane %v2814_v29, 1  ;;  %v1055_v18 = vrot.slane %v772_v56, 1  ;;  %v622_v21 = vshrl.u32 %v2669_v16, 16  ;;  %v2671_v56 = vld [vmem:[%s2780_s28 + $0x30] sm:$0xff]  }
  0x24   : > { %v835_v13 = vsel %vm787_vm4, %v830_v6, %v834_v7  ;;  %v620_v15 = vor.u32 %v618_v12, %v617_v10  ;;  %v773_v25 = vsel %vm2790_vm2, %v617_v10, 0  ;;  %v625_v27 = vshll.u32 %v2669_v16, 16 }
  0x25   : > { %1208 = vrot.lane.b32.xlu1 %v2837_v46, %s2713_s17  ;;  %982 = vrot.lane.b32.xlu0 %v811_v55, %s2714_s20  ;;  %v799_v14 = vsel %vm787_vm4, %v794_v8, %v798_v9  ;;  %v1056_v24 = vsel %vm1044_vm3, %v1054_v17, %v1055_v18  ;;  %v624_v26 = vrot.slane %v622_v21, 7  ;;  %v844_v31 = vshll.u32 %v773_v25, 16 }
  0x26   : > { %v2874_v19 = vsel %vm2790_vm2, 0, %v620_v15  ;;  %v1693_v37 = vsel %vm1691_vm5, %v2679_v33, 0  ;;  %v1058_v40 = vrot.slane %v773_v25, 1  ;;  %v629_v49 = vshrl.u32 %v2670_v43, 16  ;;  %v2672_v15 = vld [vmem:[%s2780_s28 + $0x38] sm:$0xff]  }
  0x27   : > { %v839_v23 = vshll.u32 %v2874_v19, 16  ;;  %v837_v28 = vshrl.u32 %v2874_v19, 16  ;;  %v627_v32 = vor.u32 %v625_v27, %v624_v26  ;;  %v846_v35 = vrot.slane %v844_v31, 1  ;;  %2588 = vmatpush3.bf16.msra.mxu0 %v1693_v37  ;;  %2630 = vmatpush3.bf16.msra.mxu1 %v1693_v37  ;;  %v2673_v31 = vld [vmem:[%s2780_s28 + $0x40] sm:$0xff]  }
  0x28   : > { %v1057_v39 = vrot.slane %v2874_v19, 1  ;;  %v774_v42 = vsel %vm2790_vm2, %v624_v26, 0  ;;  %v631_v52 = vrot.slane %v629_v49, 7  ;;  %v632_v53 = vshll.u32 %v2670_v43, 16 }
  0x29   : > { %1093 = vrot.lane.b32.xlu1 %v1047_v61, %s2712_s16  ;;  %1170 = vrot.lane.b32.xlu0 %v811_v55, %s2715_s26  ;;  %v841_v30 = vrot.slane %v839_v23, 1  ;;  %v2894_v36 = vsel %vm2790_vm2, 0, %v627_v32  ;;  %v856_v48 = vshll.u32 %v774_v42, 16  ;;  %v1061_v58 = vrot.slane %v774_v42, 1 }
  0x2a   : > { %v851_v41 = vshll.u32 %v2894_v36, 16  ;;  %v1059_v44 = vsel %vm1044_vm3, %v1057_v39, %v1058_v40  ;;  %v849_v45 = vshrl.u32 %v2894_v36, 16  ;;  %v634_v55 = vor.u32 %v632_v53, %v631_v52 }
  0x2b   : > { %v842_v34 = vor.u32 %v841_v30, %v837_v28  ;;  %v858_v51 = vrot.slane %v856_v48, 1  ;;  %v1060_v57 = vrot.slane %v2894_v36, 1  ;;  %v636_v60 = vshrl.u32 %v2671_v56, 16 }
  0x2c   : > { %v2923_v59 = vsel %vm2790_vm2, 0, %v634_v55  ;;  %v775_v63 = vsel %vm2790_vm2, %v631_v52, 0  ;;  %v639_v1 = vshll.u32 %v2671_v56, 16  ;;  %v643_v23 = vshrl.u32 %v2672_v15, 16  ;;  %v2677_v55 = vld [vmem:[%s2780_s28 + $0x48] sm:$0xff]  }
  0x2d   : > { %1172 = vrot.lane.b32.xlu1 %v823_v5, %s2715_s26  ;;  %1283 = vrot.lane.b32.xlu0 %v823_v5, %s2716_s27  ;;  %v847_v38 = vsel %vm787_vm4, %v842_v34, %v846_v35  ;;  %v863_v61 = vshll.u32 %v2923_v59, 16  ;;  %v1062_v62 = vsel %vm1044_vm3, %v1060_v57, %v1061_v58  ;;  %v638_v0 = vrot.slane %v636_v60, 7 }
  0x2e   : > { %v861_v2 = vshrl.u32 %v2923_v59, 16  ;;  %v868_v4 = vshll.u32 %v775_v63, 16  ;;  %v1063_v10 = vrot.slane %v2923_v59, 1  ;;  %v1064_v12 = vrot.slane %v775_v63, 1 }
  0x2f   : > { %v865_v3 = vrot.slane %v863_v61, 1  ;;  %v645_v26 = vrot.slane %v643_v23, 7  ;;  %v646_v27 = vshll.u32 %v2672_v15, 16  ;;  %v650_v35 = vshrl.u32 %v2673_v31, 16 }
  0x30   : > { %v870_v7 = vrot.slane %v868_v4, 1  ;;  %v1065_v16 = vsel %vm1044_vm3, %v1063_v10, %v1064_v12  ;;  %v657_v61 = vshrl.u32 %v2677_v55, 16 }
  0x31   : > { %1285 = vrot.lane.b32.xlu1 %v835_v13, %s2716_s27  ;;  %980 = vrot.lane.b32.xlu0 %v799_v14, %s2714_s20  ;;  %v866_v6 = vor.u32 %v865_v3, %v861_v2  ;;  %v776_v14 = vsel %vm2790_vm2, %v638_v0, 0  ;;  %v648_v30 = vor.u32 %v646_v27, %v645_v26  ;;  %v777_v39 = vsel %vm2790_vm2, %v645_v26, 0 }
  0x32   : > { %v880_v21 = vshll.u32 %v776_v14, 16  ;;  %v1067_v33 = vrot.slane %v776_v14, 1  ;;  %v652_v40 = vrot.slane %v650_v35, 7  ;;  %v1070_v52 = vrot.slane %v777_v39, 1 }
  0x33   : > { %v871_v9 = vsel %vm787_vm4, %v866_v6, %v870_v7  ;;  %v2967_v34 = vsel %vm2790_vm2, 0, %v648_v30  ;;  %v660_v2 = vshll.u32 %v2677_v55, 16  ;;  %v2680_v7 = vld [vmem:[%s2780_s28 + $0x50] sm:$0xff]  }
  0x34   : > { %v882_v25 = vrot.slane %v880_v21, 1  ;;  %v887_v37 = vshll.u32 %v2967_v34, 16  ;;  %v885_v42 = vshrl.u32 %v2967_v34, 16  ;;  %v664_v15 = vshrl.u32 %v2680_v7, 16 }
  0x35   : > { %984 = vrot.lane.b32.xlu1 %v823_v5, %s2714_s20  ;;  %1319 = vrot.lane.b32.xlu0 %v2837_v46, %s2717_s29  ;;  %v641_v5 = vor.u32 %v639_v1, %v638_v0  ;;  %v659_v1 = vrot.slane %v657_v61, 7 }
  0x36   : > { %v889_v43 = vrot.slane %v887_v37, 1 }
  0x37   : > { %v2938_v8 = vsel %vm2790_vm2, 0, %v641_v5  ;;  %v662_v6 = vor.u32 %v660_v2, %v659_v1  ;;  %v779_v23 = vsel %vm2790_vm2, %v659_v1, 0 }
  0x38   : > { %v873_v17 = vshrl.u32 %v2938_v8, 16  ;;  %v1066_v32 = vrot.slane %v2938_v8, 1  ;;  %v916_v30 = vshll.u32 %v779_v23, 16 }
  0x39   : > { %986 = vrot.lane.b32.xlu1 %v835_v13, %s2714_s20  ;;  %1321 = vrot.lane.b32.xlu0 %v1056_v24, %s2717_s29  ;;  %v3020_v14 = vsel %vm2790_vm2, 0, %v662_v6 }
  0x3a   : > { %v909_v27 = vshrl.u32 %v3020_v14, 16 }
  0x3d   : > { %1099 = vrot.lane.b32.xlu1 %v1056_v24, %s2712_s16  ;;  %1097 = vrot.lane.b32.xlu0 %v2837_v46, %s2712_s16  ;;  %v853_v46 = vrot.slane %v851_v41, 1  ;;  %v653_v41 = vshll.u32 %v2673_v31, 16 }
  0x3f   : > { %v854_v50 = vor.u32 %v853_v46, %v849_v45  ;;  %v655_v45 = vor.u32 %v653_v41, %v652_v40  ;;  %v890_v46 = vor.u32 %v889_v43, %v885_v42  ;;  %v1076_v43 = vrot.slane %v779_v23, 1 }
  0x41   : > { %1132 = vrot.lane.b32.xlu1 %v2874_v19, %s2710_s8  ;;  %1130 = vrot.lane.b32.xlu0 %v2814_v29, %s2710_s8  ;;  %v859_v54 = vsel %vm787_vm4, %v854_v50, %v858_v51  ;;  %v2982_v49 = vsel %vm2790_vm2, 0, %v655_v45  ;;  %v1069_v51 = vrot.slane %v2967_v34, 1 }
  0x42   : > { %v899_v53 = vshll.u32 %v2982_v49, 16  ;;  %v897_v57 = vshrl.u32 %v2982_v49, 16  ;;  %v1072_v12 = vrot.slane %v2982_v49, 1 }
  0x43   : > { %v1071_v56 = vsel %vm1044_vm3, %v1069_v51, %v1070_v52  ;;  %v2681_v52 = vld [vmem:[%s2780_s28 + $0x58] sm:$0xff]  }
  0x44   : > { %v901_v58 = vrot.slane %v899_v53, 1 }
  0x45   : > { %1176 = vrot.lane.b32.xlu1 %v847_v38, %s2715_s26  ;;  %1174 = vrot.lane.b32.xlu0 %v835_v13, %s2715_s26  ;;  %v875_v13 = vshll.u32 %v2938_v8, 16 }
  0x47   : > { %v877_v18 = vrot.slane %v875_v13, 1 }
  0x49   : > { %1212 = vrot.lane.b32.xlu1 %v1059_v44, %s2713_s17  ;;  %1210 = vrot.lane.b32.xlu0 %v1056_v24, %s2713_s17  ;;  %v878_v24 = vor.u32 %v877_v18, %v873_v17  ;;  %v911_v17 = vshll.u32 %v3020_v14, 16 }
  0x4b   : > { %v883_v28 = vsel %vm787_vm4, %v878_v24, %v882_v25  ;;  %v666_v24 = vrot.slane %v664_v15, 7  ;;  %v667_v25 = vshll.u32 %v2680_v7, 16 }
  0x4d   : > { %1245 = vrot.lane.b32.xlu1 %v2894_v36, %s2711_s11  ;;  %1243 = vrot.lane.b32.xlu0 %v2874_v19, %s2711_s11 }
  0x51   : > { %1289 = vrot.lane.b32.xlu1 %v859_v54, %s2716_s27  ;;  %1287 = vrot.lane.b32.xlu0 %v847_v38, %s2716_s27 }
  0x55   : > { %988 = vrot.lane.b32.xlu1 %v847_v38, %s2714_s20  ;;  %1323 = vrot.lane.b32.xlu0 %v1059_v44, %s2717_s29  ;;  %v1068_v38 = vsel %vm1044_vm3, %v1066_v32, %v1067_v33  ;;  %v669_v32 = vor.u32 %v667_v25, %v666_v24 }
  0x57   : > { %v3041_v41 = vsel %vm2790_vm2, 0, %v669_v32 }
  0x59   : > { %990 = vrot.lane.b32.xlu1 %v859_v54, %s2714_s20  ;;  %1325 = vrot.lane.b32.xlu0 %v1062_v62, %s2717_s29 }
  0x5d   : > { %1103 = vrot.lane.b32.xlu1 %v1062_v62, %s2712_s16  ;;  %1101 = vrot.lane.b32.xlu0 %v1059_v44, %s2712_s16  ;;  %v892_v44 = vshll.u32 %v777_v39, 16 }
  0x5f   : > { %v894_v48 = vrot.slane %v892_v44, 1 }
  0x61   : > { %1136 = vrot.lane.b32.xlu1 %v2923_v59, %s2710_s8  ;;  %1134 = vrot.lane.b32.xlu0 %v2894_v36, %s2710_s8  ;;  %v895_v50 = vsel %vm787_vm4, %v890_v46, %v894_v48  ;;  %v3052_v46 = vsel %vm2790_vm2, %v666_v24, 0  ;;  %v923_v48 = vshll.u32 %v3041_v41, 16  ;;  %v2682_v24 = vld [vmem:[%s2780_s28 + $0x60] sm:$0xff]  }
  0x63   : > { %v925_v61 = vrot.slane %v923_v48, 1 }
  0x65   : > { %1180 = vrot.lane.b32.xlu1 %v871_v9, %s2715_s26  ;;  %1178 = vrot.lane.b32.xlu0 %v859_v54, %s2715_s26  ;;  %v778_v54 = vsel %vm2790_vm2, %v652_v40, 0 }
  0x66   : > { %v904_v60 = vshll.u32 %v778_v54, 16  ;;  %v1073_v13 = vrot.slane %v778_v54, 1 }
  0x68   : > { %v906_v63 = vrot.slane %v904_v60, 1  ;;  %v1074_v21 = vsel %vm1044_vm3, %v1072_v12, %v1073_v13  ;;  %v921_v60 = vshrl.u32 %v3041_v41, 16  ;;  %v674_v13 = vshll.u32 %v2681_v52, 16 }
  0x69   : > { %1216 = vrot.lane.b32.xlu1 %v1065_v16, %s2713_s17  ;;  %1214 = vrot.lane.b32.xlu0 %v1062_v62, %s2713_s17  ;;  %v902_v62 = vor.u32 %v901_v58, %v897_v57 }
  0x6a   : > { %v926_v6 = vor.u32 %v925_v61, %v921_v60 }
  0x6b   : > { %v3007_v4 = vsel %vm787_vm4, %v902_v62, %v906_v63  ;;  %v671_v63 = vshrl.u32 %v2681_v52, 16 }
  0x6d   : > { %1249 = vrot.lane.b32.xlu1 %v2938_v8, %s2711_s11  ;;  %1247 = vrot.lane.b32.xlu0 %v2923_v59, %s2711_s11  ;;  %v673_v12 = vrot.slane %v671_v63, 7 }
  0x6f   : > { %v676_v23 = vor.u32 %v674_v13, %v673_v12 }
  0x71   : > { %1293 = vrot.lane.b32.xlu1 %v883_v28, %s2716_s27  ;;  %1291 = vrot.lane.b32.xlu0 %v871_v9, %s2716_s27 }
  0x75   : > { %992 = vrot.lane.b32.xlu1 %v871_v9, %s2714_s20  ;;  %1327 = vrot.lane.b32.xlu0 %v1065_v16, %s2717_s29 }
  0x79   : > { %994 = vrot.lane.b32.xlu1 %v883_v28, %s2714_s20  ;;  %1329 = vrot.lane.b32.xlu0 %v1068_v38, %s2717_s29 }
  0x7d   : > { %1107 = vrot.lane.b32.xlu1 %v1068_v38, %s2712_s16  ;;  %1105 = vrot.lane.b32.xlu0 %v1065_v16, %s2712_s16 }
  0x81   : > { %1140 = vrot.lane.b32.xlu1 %v2967_v34, %s2710_s8  ;;  %1138 = vrot.lane.b32.xlu0 %v2938_v8, %s2710_s8 }
  0x85   : > { %1184 = vrot.lane.b32.xlu1 %v895_v50, %s2715_s26  ;;  %1182 = vrot.lane.b32.xlu0 %v883_v28, %s2715_s26  ;;  %v913_v28 = vrot.slane %v911_v17, 1 }
  0x87   : > { %v914_v37 = vor.u32 %v913_v28, %v909_v27  ;;  %v1078_v27 = vrot.slane %v3041_v41, 1  ;;  %v1079_v28 = vrot.slane %v3052_v46, 1 }
  0x89   : > { %1220 = vrot.lane.b32.xlu1 %v1071_v56, %s2713_s17  ;;  %1218 = vrot.lane.b32.xlu0 %v1068_v38, %s2713_s17  ;;  %v918_v38 = vrot.slane %v916_v30, 1  ;;  %v3103_v30 = vsel %vm2790_vm2, 0, %v676_v23 }
  0x8b   : > { %v1129_v0 = vpop.permute.xlu1 %1128  ;;  %v3000_v3 = vpop.permute.xlu0 %1126  ;;  %v919_v45 = vsel %vm787_vm4, %v914_v37, %v918_v38  ;;  %v1080_v37 = vsel %vm1044_vm3, %v1078_v27, %v1079_v28  ;;  %v781_v38 = vsel %vm2790_vm2, %v673_v12, 0 }
  0x8d   : > { %1253 = vrot.lane.b32.xlu1 %v2982_v49, %s2711_s11  ;;  %1251 = vrot.lane.b32.xlu0 %v2967_v34, %s2711_s11 }
  0x8f   : > { %v3009_v5 = vpop.permute.xlu1 %1241  ;;  %v3012_v9 = vpop.permute.xlu0 %1239 }
  0x91   : > { %1297 = vrot.lane.b32.xlu1 %v3007_v4, %s2716_s27  ;;  %1295 = vrot.lane.b32.xlu0 %v895_v50, %s2716_s27 }
  0x93   : > { %v1096_v10 = vpop.permute.xlu1 %1095  ;;  %v3022_v16 = vpop.permute.xlu0 %1206 }
  0x95   : > { %996 = vrot.lane.b32.xlu1 %v895_v50, %s2714_s20  ;;  %1331 = vrot.lane.b32.xlu0 %v1071_v56, %s2717_s29 }
  0x97   : > { %v1209_v18 = vpop.permute.xlu1 %1208  ;;  %v983_v26 = vpop.permute.xlu0 %982 }
  0x98   : > { %v1355_v33 = vsel %vm1351_vm6, %v2804_v22, %v983_v26  ;;  %v1075_v22 = vrot.slane %v3020_v14, 1 }
  0x99   : > { %998 = vrot.lane.b32.xlu1 %v3007_v4, %s2714_s20  ;;  %1333 = vrot.lane.b32.xlu0 %v1074_v21, %s2717_s29  ;;  %v1388_v39 = vsel %vm1384_vm7, %v1355_v33, %v1096_v10  ;;  %v935_v33 = vshll.u32 %v3103_v30, 16 }
  0x9a   : > { %v1421_v44 = vsel %vm1417_vm8, %v1388_v39, %v1129_v0  ;;  %v3061_v55 = vsel %vm1044_vm3, %v1075_v22, %v1076_v43  ;;  %v933_v22 = vshrl.u32 %v3103_v30, 16 }
  0x9b   : > { %v1094_v31 = vpop.permute.xlu1 %1093  ;;  %v1171_v35 = vpop.permute.xlu0 %1170  ;;  %v937_v43 = vrot.slane %v935_v33, 1 }
  0x9d   : > { %1111 = vrot.lane.b32.xlu1 %v1074_v21, %s2712_s16  ;;  %1109 = vrot.lane.b32.xlu0 %v1071_v56, %s2712_s16  ;;  %v928_v56 = vshll.u32 %v3052_v46, 16 }
  0x9f   : > { %v1173_v40 = vpop.permute.xlu1 %1172  ;;  %v1284_v42 = vpop.permute.xlu0 %1283  ;;  %v930_v7 = vrot.slane %v928_v56, 1  ;;  %v1081_v56 = vrot.slane %v3103_v30, 1 }
  0xa0   : > { %v1454_v50 = vsel %vm1450_vm9, %v1421_v44, %v1173_v40  ;;  %v681_v40 = vshll.u32 %v2682_v24, 16  ;;  %v940_v44 = vshll.u32 %v781_v38, 16 }
  0xa1   : > { %1144 = vrot.lane.b32.xlu1 %v3020_v14, %s2710_s8  ;;  %1142 = vrot.lane.b32.xlu0 %v2982_v49, %s2710_s8  ;;  %v1487_v57 = vsel %vm1483_vm10, %v1454_v50, %v1209_v18  ;;  %v938_v50 = vor.u32 %v937_v43, %v933_v22 }
  0xa2   : > { %v1520_v2 = vsel %vm1516_vm11, %v1487_v57, %v3009_v5  ;;  %v1082_v57 = vrot.slane %v781_v38, 1 }
  0xa3   : > { %v1286_v51 = vpop.permute.xlu1 %1285  ;;  %v981_v53 = vpop.permute.xlu0 %980 }
  0xa4   : > { %v1353_v54 = vsel %vm1351_vm6, %v2841_v47, %v981_v53  ;;  %v1553_v15 = vsel %vm1549_vm12, %v1520_v2, %v1286_v51  ;;  %v942_v51 = vrot.slane %v940_v44, 1 }
  0xa5   : > { %1188 = vrot.lane.b32.xlu1 %v919_v45, %s2715_s26  ;;  %v1386_v58 = vsel %vm1384_vm7, %v1353_v54, %v1094_v31  ;;  %1186 = vrot.lane.b32.xlu0 %v3007_v4, %s2715_s26  ;;  %v678_v31 = vshrl.u32 %v2682_v24, 16 }
  0xa6   : > { %v1419_v47 = vsel %vm1417_vm8, %v1386_v58, %v3000_v3 }
  0xa7   : > { %v3071_v62 = vpop.permute.xlu1 %984  ;;  %v1452_v0 = vsel %vm1450_vm9, %v1419_v47, %v1171_v35  ;;  %v1320_v1 = vpop.permute.xlu0 %1319  ;;  %v680_v39 = vrot.slane %v678_v31, 7 }
  0xa8   : > { %v1485_v4 = vsel %vm1483_vm10, %v1452_v0, %v3022_v16  ;;  %v1357_v58 = vsel %vm1351_vm6, %v2798_v20, %v3071_v62  ;;  %v2683_v0 = vld [vmem:[%s2780_s28 + $0x68] sm:$0xff]   ;;  %v1083_v20 = vsel %vm1044_vm3, %v1081_v56, %v1082_v57 }
  0xa9   : > { %1224 = vrot.lane.b32.xlu1 %v3061_v55, %s2713_s17  ;;  %1222 = vrot.lane.b32.xlu0 %v1074_v21, %s2713_s17  ;;  %v1518_v3 = vsel %vm1516_vm11, %v1485_v4, %v3012_v9  ;;  %v931_v9 = vsel %vm787_vm4, %v926_v6, %v930_v7  ;;  %v683_v46 = vor.u32 %v681_v40, %v680_v39  ;;  %v782_v60 = vsel %vm2790_vm2, %v680_v39, 0 }
  0xaa   : > { %v1551_v5 = vsel %vm1549_vm12, %v1518_v3, %v1284_v42  ;;  %v952_v62 = vshll.u32 %v782_v60, 16  ;;  %v688_v28 = vshll.u32 %v2683_v0, 16  ;;  %v1085_v44 = vrot.slane %v782_v60, 1 }
  0xab   : > { %v3083_v10 = vpop.permute.xlu1 %986  ;;  %v1322_v17 = vpop.permute.xlu0 %1321  ;;  %v1584_v16 = vsel %vm1582_vm13, %v1551_v5, %v1320_v1  ;;  %v3120_v53 = vsel %vm2790_vm2, 0, %v683_v46 }
  0xac   : > { %v1586_v18 = vsel %vm1582_vm13, %v1553_v15, %v1322_v17  ;;  %2589 = vmatprep.mubr.msk.bf16.mxu0 %vm1658_vm14, %v1584_v16  ;;  %v947_v61 = vshll.u32 %v3120_v53, 16  ;;  %v1359_v3 = vsel %vm1351_vm6, %v2814_v29, %v3083_v10  ;;  %v945_v7 = vshrl.u32 %v3120_v53, 16 }
  0xad   : > { %1257 = vrot.lane.b32.xlu1 %v3041_v41, %s2711_s11  ;;  %1255 = vrot.lane.b32.xlu0 %v3020_v14, %s2711_s11  ;;  %v685_v17 = vshrl.u32 %v2683_v0, 16  ;;  %v954_v24 = vrot.slane %v952_v62, 1  ;;  %v1084_v43 = vrot.slane %v3120_v53, 1 }
  0xae   : > { %2590 = vmatmul.mubr.msk.bf16.vlgmr.msra.gmra.mrb[0].mxu0 %vm1658_vm14, %v1586_v18  ;;  %v949_v5 = vrot.slane %v947_v61, 1 }
  0xaf   : > { %v1100_v21 = vpop.permute.xlu1 %1099  ;;  %v1098_v25 = vpop.permute.xlu0 %1097  ;;  %v687_v27 = vrot.slane %v685_v17, 7 }
  0xb0   : > { %v1390_v47 = vsel %vm1384_vm7, %v1357_v58, %v1098_v25  ;;  %v1392_v12 = vsel %vm1384_vm7, %v1359_v3, %v1100_v21  ;;  %v950_v21 = vor.u32 %v949_v5, %v945_v7 }
  0xb1   : > { %1301 = vrot.lane.b32.xlu1 %v931_v9, %s2716_s27  ;;  %1299 = vrot.lane.b32.xlu0 %v919_v45, %s2716_s27  ;;  %v690_v39 = vor.u32 %v688_v28, %v687_v27  ;;  %v783_v56 = vsel %vm2790_vm2, %v687_v27, 0 }
  0xb2   : > { %v964_v60 = vshll.u32 %v783_v56, 16 }
  0xb3   : > { %v1133_v26 = vpop.permute.xlu1 %1132  ;;  %v1131_v32 = vpop.permute.xlu0 %1130 }
  0xb4   : > { %v1423_v1 = vsel %vm1417_vm8, %v1390_v47, %v1131_v32  ;;  %v1425_v16 = vsel %vm1417_vm8, %v1392_v12, %v1133_v26  ;;  %v2685_v12 = vld [vmem:[%s2780_s28 + $0x78] sm:$0xff]  }
  0xb5   : > { %1000 = vrot.lane.b32.xlu1 %v919_v45, %s2714_s20  ;;  %1335 = vrot.lane.b32.xlu0 %v3061_v55, %s2717_s29 }
  0xb7   : > { %v1177_v35 = vpop.permute.xlu1 %1176  ;;  %v1175_v42 = vpop.permute.xlu0 %1174 }
  0xb8   : > { %v1456_v4 = vsel %vm1450_vm9, %v1423_v1, %v1175_v42  ;;  %v1458_v29 = vsel %vm1450_vm9, %v1425_v16, %v1177_v35  ;;  %v955_v35 = vsel %vm787_vm4, %v950_v21, %v954_v24  ;;  %v966_v1 = vrot.slane %v964_v60, 1 }
  0xb9   : > { %1002 = vrot.lane.b32.xlu1 %v931_v9, %s2714_s20  ;;  %1337 = vrot.lane.b32.xlu0 %v1080_v37, %s2717_s29 }
  0xbb   : > { %v1213_v45 = vpop.permute.xlu1 %1212  ;;  %v1211_v48 = vpop.permute.xlu0 %1210 }
  0xbc   : > { %v1489_v6 = vsel %vm1483_vm10, %v1456_v4, %v1211_v48 }
  0xbd   : > { %1115 = vrot.lane.b32.xlu1 %v1080_v37, %s2712_s16  ;;  %1113 = vrot.lane.b32.xlu0 %v3061_v55, %s2712_s16  ;;  %v943_v55 = vsel %vm787_vm4, %v938_v50, %v942_v51 }
  0xbf   : > { %v1246_v52 = vpop.permute.xlu1 %1245  ;;  %v1244_v54 = vpop.permute.xlu0 %1243 }
  0xc0   : > { %v1522_v13 = vsel %vm1516_vm11, %v1489_v6, %v1244_v54  ;;  %v1086_v54 = vsel %vm1044_vm3, %v1084_v43, %v1085_v44  ;;  %v1088_v6 = vrot.slane %v783_v56, 1 }
  0xc1   : > { %1148 = vrot.lane.b32.xlu1 %v3103_v30, %s2710_s8  ;;  %1146 = vrot.lane.b32.xlu0 %v3041_v41, %s2710_s8 }
  0xc3   : > { %v1290_v63 = vpop.permute.xlu1 %1289  ;;  %v1288_v2 = vpop.permute.xlu0 %1287 }
  0xc4   : > { %v1555_v18 = vsel %vm1549_vm12, %v1522_v13, %v1288_v2 }
  0xc5   : > { %1192 = vrot.lane.b32.xlu1 %v943_v55, %s2715_s26  ;;  %1190 = vrot.lane.b32.xlu0 %v931_v9, %s2715_s26  ;;  %v1491_v9 = vsel %vm1483_vm10, %v1458_v29, %v1213_v45  ;;  %v3175_v45 = vsel %vm2790_vm2, 0, %v690_v39  ;;  %v492_v39 = vld [vmem:[%s416_s12] sm:$0xf] }
  0xc6   : > { %v1524_v25 = vsel %vm1516_vm11, %v1491_v9, %v1246_v52  ;;  %v959_v48 = vshll.u32 %v3175_v45, 16  ;;  %v957_v58 = vshrl.u32 %v3175_v45, 16  ;;  %v1087_v3 = vrot.slane %v3175_v45, 1 }
  0xc7   : > { %v3148_v15 = vpop.permute.xlu1 %988  ;;  %v1324_v23 = vpop.permute.xlu0 %1323  ;;  %v1557_v31 = vsel %vm1549_vm12, %v1524_v25, %v1290_v63  ;;  %v699_v25 = vshrl.u32 %v2685_v12, 16 }
  0xc8   : > { %v1588_v10 = vsel %vm1582_vm13, %v1555_v18, %v1324_v23 }
  0xc9   : > { %1228 = vrot.lane.b32.xlu1 %v1083_v20, %s2713_s17  ;;  %1226 = vrot.lane.b32.xlu0 %v1080_v37, %s2713_s17  ;;  %v2684_v37 = vld [vmem:[%s2780_s28 + $0x70] sm:$0xff]  }
  0xca   : > { %2593 = vmatprep.mubr.msk.bf16.mxu0 %vm1658_vm14, %v1588_v10  ;;  %v692_v42 = vshrl.u32 %v2684_v37, 16  ;;  %v695_v51 = vshll.u32 %v2684_v37, 16 }
  0xcb   : > { %v3159_v26 = vpop.permute.xlu1 %990  ;;  %v1326_v32 = vpop.permute.xlu0 %1325 }
  0xcc   : > { %v1590_v33 = vsel %vm1582_vm13, %v1557_v31, %v1326_v32  ;;  %v694_v50 = vrot.slane %v692_v42, 7  ;;  %v1363_v9 = vsel %vm1351_vm6, %v2894_v36, %v3159_v26 }
  0xcd   : > { %1261 = vrot.lane.b32.xlu1 %v3120_v53, %s2711_s11  ;;  %1259 = vrot.lane.b32.xlu0 %v3103_v30, %s2711_s11 }
  0xce   : > { %2594 = vmatmul.mubr.msk.bf16.gmra.mrb[4].mxu0 %vm1658_vm14, %v1590_v33  ;;  %v697_v61 = vor.u32 %v695_v51, %v694_v50  ;;  %v784_v16 = vsel %vm2790_vm2, %v694_v50, 0 }
  0xcf   : > { %v1104_v38 = vpop.permute.xlu1 %1103  ;;  %v1102_v40 = vpop.permute.xlu0 %1101  ;;  %v976_v24 = vshll.u32 %v784_v16, 16 }
  0xd0   : > { %v3190_v2 = vsel %vm2790_vm2, 0, %v697_v61  ;;  %v1396_v27 = vsel %vm1384_vm7, %v1363_v9, %v1104_v38 }
  0xd1   : > { %1305 = vrot.lane.b32.xlu1 %v955_v35, %s2716_s27  ;;  %1303 = vrot.lane.b32.xlu0 %v943_v55, %s2716_s27  ;;  %v971_v7 = vshll.u32 %v3190_v2, 16  ;;  %v978_v42 = vrot.slane %v976_v24, 1 }
  0xd3   : > { %v1137_v22 = vpop.permute.xlu1 %1136  ;;  %v1135_v46 = vpop.permute.xlu0 %1134  ;;  %v973_v10 = vrot.slane %v971_v7, 1 }
  0xd4   : > { %v1429_v32 = vsel %vm1417_vm8, %v1396_v27, %v1137_v22  ;;  %v701_v22 = vrot.slane %v699_v25, 7 }
  0xd5   : > { %1004 = vrot.lane.b32.xlu1 %v943_v55, %s2714_s20  ;;  %1339 = vrot.lane.b32.xlu0 %v1083_v20, %s2717_s29  ;;  %v961_v55 = vrot.slane %v959_v48, 1  ;;  %v494_v48 = vmul.bf16 0.0, %v492_v39 }
  0xd6   : > { %v785_v7 = vsel %vm2790_vm2, %v701_v22, 0 }
  0xd7   : > { %v1181_v52 = vpop.permute.xlu1 %1180  ;;  %v1179_v57 = vpop.permute.xlu0 %1178  ;;  %v962_v0 = vor.u32 %v961_v55, %v957_v58  ;;  %v1204_v27 = vrot.slane %v785_v7, 1 }
  0xd8   : > { %v1462_v36 = vsel %vm1450_vm9, %v1429_v32, %v1181_v52 }
  0xd9   : > { %1006 = vrot.lane.b32.xlu1 %v955_v35, %s2714_s20  ;;  %1341 = vrot.lane.b32.xlu0 %v1086_v54, %s2717_s29  ;;  %v967_v5 = vsel %vm787_vm4, %v962_v0, %v966_v1 }
  0xdb   : > { %v1217_v47 = vpop.permute.xlu1 %1216  ;;  %v1215_v63 = vpop.permute.xlu0 %1214 }
  0xdd   : > { %1119 = vrot.lane.b32.xlu1 %v1086_v54, %s2712_s16  ;;  %1117 = vrot.lane.b32.xlu0 %v1083_v20, %s2712_s16  ;;  %v1361_v20 = vsel %vm1351_vm6, %v2874_v19, %v3148_v15  ;;  %v3211_v19 = vsel %vm1044_vm3, %v1087_v3, %v1088_v6  ;;  %v969_v15 = vshrl.u32 %v3190_v2, 16 }
  0xde   : > { %v1394_v13 = vsel %vm1384_vm7, %v1361_v20, %v1102_v40  ;;  %v493_v40 = vld [vmem:[%s416_s12 + $0x4] sm:$0xf] }
  0xdf   : > { %v1250_v4 = vpop.permute.xlu1 %1249  ;;  %v1248_v62 = vpop.permute.xlu0 %1247  ;;  %v1427_v18 = vsel %vm1417_vm8, %v1394_v13, %v1135_v46  ;;  %v974_v38 = vor.u32 %v973_v10, %v969_v15  ;;  %v702_v46 = vshll.u32 %v2685_v12, 16  ;;  %v495_v50 = vmul.bf16 0.0, %v493_v40 }
  0xe0   : > { %v1460_v29 = vsel %vm1450_vm9, %v1427_v18, %v1179_v57 }
  0xe1   : > { %1152 = vrot.lane.b32.xlu1 %v3175_v45, %s2710_s8  ;;  %1150 = vrot.lane.b32.xlu0 %v3120_v53, %s2710_s8  ;;  %v1493_v21 = vsel %vm1483_vm10, %v1460_v29, %v1215_v63  ;;  %v704_v58 = vor.u32 %v702_v46, %v701_v22  ;;  %v2368_v55 = vcombine.low %v494_v48, %v495_v50  ;;  %v1091_v63 = vrot.slane %v784_v16, 1 }
  0xe2   : > { %v1526_v28 = vsel %vm1516_vm11, %v1493_v21, %v1248_v62  ;;  %v1166_v16 = vshll.u32 %v785_v7, 16 }
  0xe3   : > { %v1294_v17 = vpop.permute.xlu1 %1293  ;;  %v1292_v23 = vpop.permute.xlu0 %1291  ;;  %v3251_v0 = vsel %vm2790_vm2, 0, %v704_v58  ;;  %v706_v1 = vshrl.u32 %v2368_v55, 16  ;;  %v709_v12 = vshll.u32 %v2368_v55, 16 }
  0xe4   : > { %v1559_v33 = vsel %vm1549_vm12, %v1526_v28, %v1292_v23  ;;  %v1161_v62 = vshll.u32 %v3251_v0, 16  ;;  %v1168_v10 = vrot.slane %v1166_v16, 1  ;;  %v1203_v25 = vrot.slane %v3251_v0, 1 }
  0xe5   : > { %1196 = vrot.lane.b32.xlu1 %v967_v5, %s2715_s26  ;;  %1194 = vrot.lane.b32.xlu0 %v955_v35, %s2715_s26  ;;  %v1495_v35 = vsel %vm1483_vm10, %v1462_v36, %v1217_v47  ;;  %v1090_v47 = vrot.slane %v3190_v2, 1  ;;  %v708_v20 = vrot.slane %v706_v1, 7 }
  0xe6   : > { %v1528_v43 = vsel %vm1516_vm11, %v1495_v35, %v1250_v4 }
  0xe7   : > { %v3224_v31 = vpop.permute.xlu1 %992  ;;  %v1328_v37 = vpop.permute.xlu0 %1327  ;;  %v1561_v51 = vsel %vm1549_vm12, %v1528_v43, %v1294_v17  ;;  %v1092_v6 = vsel %vm1044_vm3, %v1090_v47, %v1091_v63  ;;  %v1163_v17 = vrot.slane %v1161_v62, 1  ;;  %v711_v23 = vor.u32 %v709_v12, %v708_v20 }
  0xe8   : > { %v1592_v26 = vsel %vm1582_vm13, %v1559_v33, %v1328_v37  ;;  %v1365_v28 = vsel %vm1351_vm6, %v2923_v59, %v3224_v31  ;;  %v786_v39 = vsel %vm2790_vm2, %v708_v20, 0  ;;  %v1205_v59 = vsel %vm1044_vm3, %v1203_v25, %v1204_v27 }
  0xe9   : > { %1232 = vrot.lane.b32.xlu1 %v3211_v19, %s2713_s17  ;;  %1230 = vrot.lane.b32.xlu0 %v1086_v54, %s2713_s17  ;;  %v979_v54 = vsel %vm787_vm4, %v974_v38, %v978_v42  ;;  %v768_v21 = vsel %vm2790_vm2, 0, %v711_v23  ;;  %v1279_v42 = vshll.u32 %v786_v39, 16  ;;  %v1317_v1 = vrot.slane %v786_v39, 1 }
  0xea   : > { %2597 = vmatprep.mubr.msk.bf16.mxu0 %vm1658_vm14, %v1592_v26  ;;  %v1274_v32 = vshll.u32 %v768_v21, 16  ;;  %v1272_v31 = vshrl.u32 %v768_v21, 16  ;;  %v1316_v47 = vrot.slane %v768_v21, 1 }
  0xeb   : > { %v3236_v44 = vpop.permute.xlu1 %994  ;;  %v1330_v52 = vpop.permute.xlu0 %1329 }
  0xec   : > { %v1594_v56 = vsel %vm1582_vm13, %v1561_v51, %v1330_v52  ;;  %v1367_v35 = vsel %vm1351_vm6, %v2938_v8, %v3236_v44  ;;  %v1276_v11 = vrot.slane %v1274_v32, 1 }
  0xed   : > { %1265 = vrot.lane.b32.xlu1 %v3190_v2, %s2711_s11  ;;  %1263 = vrot.lane.b32.xlu0 %v3175_v45, %s2711_s11 }
  0xee   : > { %2598 = vmatmul.mubr.msk.bf16.gmra.mrb[8].mxu0 %vm1658_vm14, %v1594_v56  ;;  %v1277_v56 = vor.u32 %v1276_v11, %v1272_v31 }
  0xef   : > { %v1108_v57 = vpop.permute.xlu1 %1107  ;;  %v1106_v60 = vpop.permute.xlu0 %1105 }
  0xf0   : > { %v1398_v33 = vsel %vm1384_vm7, %v1365_v28, %v1106_v60  ;;  %v1400_v22 = vsel %vm1384_vm7, %v1367_v35, %v1108_v57 }
  0xf1   : > { %1309 = vrot.lane.b32.xlu1 %v979_v54, %s2716_s27  ;;  %1307 = vrot.lane.b32.xlu0 %v967_v5, %s2716_s27 }
  0xf3   : > { %v1141_v61 = vpop.permute.xlu1 %1140  ;;  %v1139_v4 = vpop.permute.xlu0 %1138 }
  0xf4   : > { %v1431_v40 = vsel %vm1417_vm8, %v1398_v33, %v1139_v4  ;;  %v1433_v48 = vsel %vm1417_vm8, %v1400_v22, %v1141_v61 }
  0xf5   : > { %1008 = vrot.lane.b32.xlu1 %v967_v5, %s2714_s20  ;;  %1343 = vrot.lane.b32.xlu0 %v3211_v19, %s2717_s29  ;;  %v1159_v5 = vshrl.u32 %v3251_v0, 16 }
  0xf7   : > { %v1185_v3 = vpop.permute.xlu1 %1184  ;;  %v1183_v13 = vpop.permute.xlu0 %1182  ;;  %v1164_v15 = vor.u32 %v1163_v17, %v1159_v5 }
  0xf8   : > { %v1464_v26 = vsel %vm1450_vm9, %v1431_v40, %v1183_v13  ;;  %v1466_v52 = vsel %vm1450_vm9, %v1433_v48, %v1185_v3  ;;  %v1318_v3 = vsel %vm1044_vm3, %v1316_v47, %v1317_v1 }
  0xf9   : > { %1010 = vrot.lane.b32.xlu1 %v979_v54, %s2714_s20  ;;  %1345 = vrot.lane.b32.xlu0 %v1092_v6, %s2717_s29 }
  0xfb   : > { %v1221_v18 = vpop.permute.xlu1 %1220  ;;  %v1219_v29 = vpop.permute.xlu0 %1218 }
  0xfc   : > { %v1497_v38 = vsel %vm1483_vm10, %v1464_v26, %v1219_v29  ;;  %v1499_v44 = vsel %vm1483_vm10, %v1466_v52, %v1221_v18 }
  0xfd   : > { %1123 = vrot.lane.b32.xlu1 %v1092_v6, %s2712_s16  ;;  %1121 = vrot.lane.b32.xlu0 %v3211_v19, %s2712_s16  ;;  %v1169_v19 = vsel %vm787_vm4, %v1164_v15, %v1168_v10 }
  0xff   : > { %v1254_v9 = vpop.permute.xlu1 %1253  ;;  %v1252_v24 = vpop.permute.xlu0 %1251 }
 0x100   : > { %v1530_v43 = vsel %vm1516_vm11, %v1497_v38, %v1252_v24  ;;  %v1532_v57 = vsel %vm1516_vm11, %v1499_v44, %v1254_v9 }
 0x101   : > { %1156 = vrot.lane.b32.xlu1 %v3251_v0, %s2710_s8  ;;  %1154 = vrot.lane.b32.xlu0 %v3190_v2, %s2710_s8 }
 0x103   : > { %v1298_v37 = vpop.permute.xlu1 %1297  ;;  %v1296_v36 = vpop.permute.xlu0 %1295 }
 0x104   : > { %v1563_v50 = vsel %vm1549_vm12, %v1530_v43, %v1296_v36  ;;  %v1565_v55 = vsel %vm1549_vm12, %v1532_v57, %v1298_v37 }
 0x105   : > { %1200 = vrot.lane.b32.xlu1 %v1169_v19, %s2715_s26  ;;  %1198 = vrot.lane.b32.xlu0 %v979_v54, %s2715_s26  ;;  %v1281_v54 = vrot.slane %v1279_v42, 1 }
 0x107   : > { %v997_v46 = vpop.permute.xlu1 %996  ;;  %v1332_v51 = vpop.permute.xlu0 %1331  ;;  %v1282_v63 = vsel %vm787_vm4, %v1277_v56, %v1281_v54 }
 0x108   : > { %v1596_v8 = vsel %vm1582_vm13, %v1563_v50, %v1332_v51  ;;  %v1369_v16 = vsel %vm1351_vm6, %v2967_v34, %v997_v46 }
 0x109   : > { %1236 = vrot.lane.b32.xlu1 %v1205_v59, %s2713_s17  ;;  %1234 = vrot.lane.b32.xlu0 %v1092_v6, %s2713_s17 }
 0x10a   : > { %2601 = vmatprep.mubr.msk.bf16.mxu0 %vm1658_vm14, %v1596_v8 }
 0x10b   : > { %v999_v58 = vpop.permute.xlu1 %998  ;;  %v1334_v60 = vpop.permute.xlu0 %1333 }
 0x10c   : > { %v1598_v61 = vsel %vm1582_vm13, %v1565_v55, %v1334_v60  ;;  %v1371_v9 = vsel %vm1351_vm6, %v2982_v49, %v999_v58 }
 0x10d   : > { %1269 = vrot.lane.b32.xlu1 %v768_v21, %s2711_s11  ;;  %1267 = vrot.lane.b32.xlu0 %v3251_v0, %s2711_s11 }
 0x10e   : > { %2602 = vmatmul.mubr.msk.bf16.gmra.mrb[12].mxu0 %vm1658_vm14, %v1598_v61 }
 0x10f   : > { %v1112_v4 = vpop.permute.xlu1 %1111  ;;  %v1110_v62 = vpop.permute.xlu0 %1109 }
 0x110   : > { %v1402_v18 = vsel %vm1384_vm7, %v1369_v16, %v1110_v62  ;;  %v1404_v24 = vsel %vm1384_vm7, %v1371_v9, %v1112_v4 }
 0x111   : > { %1313 = vrot.lane.b32.xlu1 %v1282_v63, %s2716_s27  ;;  %1311 = vrot.lane.b32.xlu0 %v1169_v19, %s2716_s27 }
 0x113   : > { %v1145_v6 = vpop.permute.xlu1 %1144  ;;  %v1143_v7 = vpop.permute.xlu0 %1142 }
 0x114   : > { %v1435_v29 = vsel %vm1417_vm8, %v1402_v18, %v1143_v7  ;;  %v1437_v34 = vsel %vm1417_vm8, %v1404_v24, %v1145_v6 }
 0x115   : > { %1349 = vrot.lane.b32.xlu1 %v1318_v3, %s2717_s29  ;;  %1347 = vrot.lane.b32.xlu0 %v1205_v59, %s2717_s29 }
 0x117   : > { %v1189_v0 = vpop.permute.xlu1 %1188  ;;  %v1187_v20 = vpop.permute.xlu0 %1186 }
 0x118   : > { %v1468_v10 = vsel %vm1450_vm9, %v1435_v29, %v1187_v20  ;;  %v1470_v32 = vsel %vm1450_vm9, %v1437_v34, %v1189_v0 }
 0x11b   : > { %v1225_v12 = vpop.permute.xlu1 %1224  ;;  %v1223_v13 = vpop.permute.xlu0 %1222 }
 0x11c   : > { %v1501_v21 = vsel %vm1483_vm10, %v1468_v10, %v1223_v13  ;;  %v1503_v37 = vsel %vm1483_vm10, %v1470_v32, %v1225_v12 }
 0x11f   : > { %v1258_v5 = vpop.permute.xlu1 %1257  ;;  %v1256_v17 = vpop.permute.xlu0 %1255 }
 0x120   : > { %v1534_v25 = vsel %vm1516_vm11, %v1501_v21, %v1256_v17  ;;  %v1536_v49 = vsel %vm1516_vm11, %v1503_v37, %v1258_v5 }
 0x123   : > { %v1302_v23 = vpop.permute.xlu1 %1301  ;;  %v1300_v15 = vpop.permute.xlu0 %1299 }
 0x124   : > { %v1567_v28 = vsel %vm1549_vm12, %v1534_v25, %v1300_v15  ;;  %v1569_v40 = vsel %vm1549_vm12, %v1536_v49, %v1302_v23 }
 0x127   : > { %v1001_v27 = vpop.permute.xlu1 %1000  ;;  %v1336_v19 = vpop.permute.xlu0 %1335 }
 0x128   : > { %v1600_v33 = vsel %vm1582_vm13, %v1567_v28, %v1336_v19  ;;  %v1373_v50 = vsel %vm1351_vm6, %v3020_v14, %v1001_v27 }
 0x129   : > { %2605 = vmatprep.mubr.msk.bf16.mxu1 %vm1658_vm14, %v1600_v33 }
 0x12b   : > { %v1003_v39 = vpop.permute.xlu1 %1002  ;;  %v1338_v36 = vpop.permute.xlu0 %1337 }
 0x12c   : > { %v1602_v26 = vsel %vm1582_vm13, %v1569_v40, %v1338_v36  ;;  %v1375_v54 = vsel %vm1351_vm6, %v3041_v41, %v1003_v39 }
 0x12d   : > { %2606 = vmatmul.mubr.msk.bf16.vlgmr.msra.gmra.mrb[0].mxu1 %vm1658_vm14, %v1602_v26 }
 0x12f   : > { %v1116_v59 = vpop.permute.xlu1 %1115  ;;  %v1114_v31 = vpop.permute.xlu0 %1113 }
 0x130   : > { %v1406_v51 = vsel %vm1384_vm7, %v1373_v50, %v1114_v31  ;;  %v1408_v58 = vsel %vm1384_vm7, %v1375_v54, %v1116_v59 }
 0x133   : > { %v1149_v35 = vpop.permute.xlu1 %1148  ;;  %v1147_v38 = vpop.permute.xlu0 %1146 }
 0x134   : > { %v1439_v8 = vsel %vm1417_vm8, %v1406_v51, %v1147_v38  ;;  %v1441_v14 = vsel %vm1417_vm8, %v1408_v58, %v1149_v35 }
 0x137   : > { %v1193_v11 = vpop.permute.xlu1 %1192  ;;  %v1191_v42 = vpop.permute.xlu0 %1190 }
 0x138   : > { %v1472_v56 = vsel %vm1450_vm9, %v1439_v8, %v1191_v42  ;;  %v1474_v63 = vsel %vm1450_vm9, %v1441_v14, %v1193_v11 }
 0x13b   : > { %v1229_v22 = vpop.permute.xlu1 %1228  ;;  %v1227_v43 = vpop.permute.xlu0 %1226 }
 0x13c   : > { %v1505_v57 = vsel %vm1483_vm10, %v1472_v56, %v1227_v43  ;;  %v1507_v4 = vsel %vm1483_vm10, %v1474_v63, %v1229_v22 }
 0x13f   : > { %v1262_v46 = vpop.permute.xlu1 %1261  ;;  %v1260_v48 = vpop.permute.xlu0 %1259 }
 0x140   : > { %v1538_v55 = vsel %vm1516_vm11, %v1505_v57, %v1260_v48  ;;  %v1540_v41 = vsel %vm1516_vm11, %v1507_v4, %v1262_v46 }
 0x143   : > { %v1306_v52 = vpop.permute.xlu1 %1305  ;;  %v1304_v44 = vpop.permute.xlu0 %1303 }
 0x144   : > { %v1571_v61 = vsel %vm1549_vm12, %v1538_v55, %v1304_v44  ;;  %v1573_v3 = vsel %vm1549_vm12, %v1540_v41, %v1306_v52  ;;  %v3377_v44 = vld [vmem:[%s3667_s4] ss:$0 sm:$0xff] }
 0x147   : > { %v1005_v60 = vpop.permute.xlu1 %1004  ;;  %v1340_v47 = vpop.permute.xlu0 %1339 }
 0x148   : > { %v1604_v1 = vsel %vm1582_vm13, %v1571_v61, %v1340_v47  ;;  %v1377_v15 = vsel %vm1351_vm6, %v3103_v30, %v1005_v60 }
 0x149   : > { %2609 = vmatprep.mubr.msk.bf16.mxu1 %vm1658_vm14, %v1604_v1 }
 0x14b   : > { %v1007_v62 = vpop.permute.xlu1 %1006  ;;  %v1342_v6 = vpop.permute.xlu0 %1341 }
 0x14c   : > { %v1606_v7 = vsel %vm1582_vm13, %v1573_v3, %v1342_v6  ;;  %v1379_v27 = vsel %vm1351_vm6, %v3120_v53, %v1007_v62 }
 0x14d   : > { %2610 = vmatmul.mubr.msk.bf16.gmra.mrb[4].mxu1 %vm1658_vm14, %v1606_v7 }
 0x14f   : > { %v1120_v0 = vpop.permute.xlu1 %1119  ;;  %v1118_v20 = vpop.permute.xlu0 %1117 }
 0x150   : > { %v1410_v10 = vsel %vm1384_vm7, %v1377_v15, %v1118_v20  ;;  %v1412_v28 = vsel %vm1384_vm7, %v1379_v27, %v1120_v0 }
 0x153   : > { %v1153_v12 = vpop.permute.xlu1 %1152  ;;  %v1151_v13 = vpop.permute.xlu0 %1150 }
 0x154   : > { %v1443_v21 = vsel %vm1417_vm8, %v1410_v10, %v1151_v13  ;;  %v1445_v30 = vsel %vm1417_vm8, %v1412_v28, %v1153_v12 }
 0x157   : > { %v1197_v5 = vpop.permute.xlu1 %1196  ;;  %v1195_v17 = vpop.permute.xlu0 %1194 }
 0x158   : > { %v1476_v25 = vsel %vm1450_vm9, %v1443_v21, %v1195_v17  ;;  %v1478_v49 = vsel %vm1450_vm9, %v1445_v30, %v1197_v5 }
 0x15b   : > { %v1233_v16 = vpop.permute.xlu1 %1232  ;;  %v1231_v18 = vpop.permute.xlu0 %1230 }
 0x15c   : > { %v1509_v34 = vsel %vm1483_vm10, %v1476_v25, %v1231_v18  ;;  %v1511_v40 = vsel %vm1483_vm10, %v1478_v49, %v1233_v16 }
 0x15f   : > { %v1266_v23 = vpop.permute.xlu1 %1265  ;;  %v1264_v29 = vpop.permute.xlu0 %1263 }
 0x160   : > { %v1542_v19 = vsel %vm1516_vm11, %v1509_v34, %v1264_v29  ;;  %v1544_v53 = vsel %vm1516_vm11, %v1511_v40, %v1266_v23 }
 0x163   : > { %v1310_v9 = vpop.permute.xlu1 %1309  ;;  %v1308_v24 = vpop.permute.xlu0 %1307 }
 0x164   : > { %v1575_v33 = vsel %vm1549_vm12, %v1542_v19, %v1308_v24  ;;  %v1577_v26 = vsel %vm1549_vm12, %v1544_v53, %v1310_v9 }
 0x167   : > { %v1009_v32 = vpop.permute.xlu1 %1008  ;;  %v1344_v37 = vpop.permute.xlu0 %1343 }
 0x168   : > { %v1608_v39 = vsel %vm1582_vm13, %v1575_v33, %v1344_v37  ;;  %v1381_v56 = vsel %vm1351_vm6, %v3175_v45, %v1009_v32 }
 0x169   : > { %2613 = vmatprep.mubr.msk.bf16.mxu1 %vm1658_vm14, %v1608_v39 }
 0x16b   : > { %v1011_v36 = vpop.permute.xlu1 %1010  ;;  %v1346_v59 = vpop.permute.xlu0 %1345 }
 0x16c   : > { %v1610_v31 = vsel %vm1582_vm13, %v1577_v26, %v1346_v59  ;;  %v1383_v52 = vsel %vm1351_vm6, %v3190_v2, %v1011_v36 }
 0x16d   : > { %2614 = vmatmul.mubr.msk.bf16.gmra.mrb[8].mxu1 %vm1658_vm14, %v1610_v31 }
 0x16f   : > { %v1124_v35 = vpop.permute.xlu1 %1123  ;;  %v1122_v38 = vpop.permute.xlu0 %1121 }
 0x170   : > { %v1416_v54 = vsel %vm1384_vm7, %v1383_v52, %v1124_v35  ;;  %v1414_v58 = vsel %vm1384_vm7, %v1381_v56, %v1122_v38 }
 0x173   : > { %v1157_v11 = vpop.permute.xlu1 %1156  ;;  %v1155_v42 = vpop.permute.xlu0 %1154 }
 0x174   : > { %v1449_v55 = vsel %vm1417_vm8, %v1416_v54, %v1157_v11  ;;  %v1447_v2 = vsel %vm1417_vm8, %v1414_v58, %v1155_v42 }
 0x177   : > { %v1201_v22 = vpop.permute.xlu1 %1200  ;;  %v1199_v43 = vpop.permute.xlu0 %1198 }
 0x178   : > { %v1482_v61 = vsel %vm1450_vm9, %v1449_v55, %v1201_v22  ;;  %v1480_v4 = vsel %vm1450_vm9, %v1447_v2, %v1199_v43 }
 0x17b   : > { %v1237_v46 = vpop.permute.xlu1 %1236  ;;  %v1235_v48 = vpop.permute.xlu0 %1234 }
 0x17c   : > { %v1515_v41 = vsel %vm1483_vm10, %v1482_v61, %v1237_v46  ;;  %v1513_v6 = vsel %vm1483_vm10, %v1480_v4, %v1235_v48 }
 0x17f   : > { %v1270_v50 = vpop.permute.xlu1 %1269  ;;  %v1268_v51 = vpop.permute.xlu0 %1267 }
 0x180   : > { %v1548_v7 = vsel %vm1516_vm11, %v1515_v41, %v1270_v50  ;;  %v1546_v20 = vsel %vm1516_vm11, %v1513_v6, %v1268_v51 }
 0x181   : > { %v2591_v8 = vpop.f32.mrb[0].mxu0 }
 0x182   : > { %v1729_v57 = vpop.f32.mrb[1].mxu0  ;;  %v3387_v47 = vadd.f32 %v2591_v8, %v3377_v44 }
 0x183   : > { %v2592_v60 = vpop.f32.mrb[2].mxu0  ;;  %v1314_v14 = vpop.permute.xlu1 %1313  ;;  %v3395_v62 = vadd.f32 %v3377_v44, %v1729_v57 }
 0x184   : > { %v3390_v63 = vadd.f32 %v2592_v60, %v3377_v44  ;;  %v1732_v45 = vpop.f32.mrb[3].mxu0  ;;  %v1312_v1 = vpop.permute.xlu0 %1311  ;;  %v1581_v12 = vsel %vm1549_vm12, %v1548_v7, %v1314_v14 }
 0x185   : > { %v3404_v3 = vadd.f32 %v3377_v44, %v1732_v45  ;;  %v1579_v17 = vsel %vm1549_vm12, %v1546_v20, %v1312_v1 }
 0x186   : > { %v2470_v0 = vpack.c.bf16 %v3390_v63, %v3387_v47 }
 0x187   : > { %v2465_v13 = vpack.c.bf16 %v3404_v3, %v3395_v62  ;;  %v1350_v5 = vpop.permute.xlu1 %1349  ;;  %v2016_v48 = vadd.f32 %v3404_v3, %v3395_v62 }
 0x188   : > { %2543 = vst [vmem:[%s3401_s15 + $0x8] sm:$0xff] %v2470_v0   ;;  %v1614_v16 = vsel %vm1582_vm13, %v1581_v12, %v1350_v5  ;;  %v1348_v18 = vpop.permute.xlu0 %1347 }
 0x189   : > { %2466 = vst [vmem:[%s3401_s15] sm:$0xff] %v2465_v13   ;;  %v1612_v23 = vsel %vm1582_vm13, %v1579_v17, %v1348_v18  ;;  %v2017_v50 = vadd.f32 %v2016_v48, %v3387_v47 }
 0x18a   : > { %2617 = vmatprep.mubr.msk.bf16.mxu1 %vm1658_vm14, %v1612_v23 }
 0x18b   : > { %2618 = vmatmul.mubr.msk.bf16.gmra.mrb[12].mxu1 %vm1658_vm14, %v1614_v16  ;;  %v2018_v51 = vadd.f32 %v2017_v50, %v3390_v63 }
 0x1a1   : > { %v2595_v29 = vpop.f32.mrb[4].mxu0 }
 0x1a2   : > { %v1745_v15 = vpop.f32.mrb[5].mxu0  ;;  %v3422_v9 = vadd.f32 %v2595_v29, %v3377_v44 }
 0x1a3   : > { %v2596_v10 = vpop.f32.mrb[6].mxu0  ;;  %v3428_v25 = vadd.f32 %v3377_v44, %v1745_v15 }
 0x1a4   : > { %v3425_v21 = vadd.f32 %v2596_v10, %v3377_v44  ;;  %v1748_v24 = vpop.f32.mrb[7].mxu0 }
 0x1a5   : > { %v3431_v27 = vadd.f32 %v3377_v44, %v1748_v24  ;;  %v2019_v52 = vadd.f32 %v2018_v51, %v3428_v25 }
 0x1a6   : > { %v2480_v34 = vpack.c.bf16 %v3425_v21, %v3422_v9 }
 0x1a7   : > { %v2475_v28 = vpack.c.bf16 %v3431_v27, %v3428_v25  ;;  %v2020_v54 = vadd.f32 %v2019_v52, %v3431_v27 }
 0x1a8   : > { %2545 = vst [vmem:[%s3401_s15 + $0x18] sm:$0xff] %v2480_v34  }
 0x1a9   : > { %2544 = vst [vmem:[%s3401_s15 + $0x10] sm:$0xff] %v2475_v28   ;;  %v2021_v45 = vadd.f32 %v2020_v54, %v3422_v9 }
 0x1ab   : > { %v2022_v4 = vadd.f32 %v2021_v45, %v3425_v21 }
 0x1c1   : > { %v2599_v19 = vpop.f32.mrb[8].mxu0 }
 0x1c2   : > { %v1761_v32 = vpop.f32.mrb[9].mxu0  ;;  %v3440_v33 = vadd.f32 %v2599_v19, %v3377_v44 }
 0x1c3   : > { %v2600_v30 = vpop.f32.mrb[10].mxu0  ;;  %v3446_v39 = vadd.f32 %v3377_v44, %v1761_v32 }
 0x1c4   : > { %v3443_v37 = vadd.f32 %v2600_v30, %v3377_v44  ;;  %v1764_v49 = vpop.f32.mrb[11].mxu0 }
 0x1c5   : > { %v3449_v40 = vadd.f32 %v3377_v44, %v1764_v49  ;;  %v2023_v41 = vadd.f32 %v2022_v4, %v3446_v39 }
 0x1c6   : > { %v2490_v53 = vpack.c.bf16 %v3443_v37, %v3440_v33 }
 0x1c7   : > { %v2485_v36 = vpack.c.bf16 %v3449_v40, %v3446_v39  ;;  %v2024_v6 = vadd.f32 %v2023_v41, %v3449_v40 }
 0x1c8   : > { %2547 = vst [vmem:[%s3401_s15 + $0x28] sm:$0xff] %v2490_v53  }
 0x1c9   : > { %2546 = vst [vmem:[%s3401_s15 + $0x20] sm:$0xff] %v2485_v36   ;;  %v2025_v7 = vadd.f32 %v2024_v6, %v3440_v33 }
 0x1cb   : > { %v2026_v0 = vadd.f32 %v2025_v7, %v3443_v37 }
 0x1e1   : > { %v2603_v26 = vpop.f32.mrb[12].mxu0 }
 0x1e2   : > { %v1777_v59 = vpop.f32.mrb[13].mxu0  ;;  %v3458_v35 = vadd.f32 %v2603_v26, %v3377_v44 }
 0x1e3   : > { %v2604_v31 = vpop.f32.mrb[14].mxu0  ;;  %v3464_v42 = vadd.f32 %v3377_v44, %v1777_v59 }
 0x1e4   : > { %v3461_v38 = vadd.f32 %v2604_v31, %v3377_v44  ;;  %v1780_v11 = vpop.f32.mrb[15].mxu0 }
 0x1e5   : > { %v3467_v22 = vadd.f32 %v3377_v44, %v1780_v11  ;;  %v2027_v20 = vadd.f32 %v2026_v0, %v3464_v42 }
 0x1e6   : > { %v2500_v43 = vpack.c.bf16 %v3461_v38, %v3458_v35 }
 0x1e7   : > { %v2495_v46 = vpack.c.bf16 %v3467_v22, %v3464_v42  ;;  %v2028_v12 = vadd.f32 %v2027_v20, %v3467_v22 }
 0x1e8   : > { %2549 = vst [vmem:[%s3401_s15 + $0x38] sm:$0xff] %v2500_v43  }
 0x1e9   : > { %2548 = vst [vmem:[%s3401_s15 + $0x30] sm:$0xff] %v2495_v46   ;;  %v2029_v17 = vadd.f32 %v2028_v12, %v3458_v35 }
 0x1eb   : > { %v2030_v34 = vadd.f32 %v2029_v17, %v3461_v38 }
 0x200   : > { %v2607_v8 = vpop.f32.mrb[0].mxu1 }
 0x201   : > { %v1793_v56 = vpop.f32.mrb[1].mxu1  ;;  %v3482_v58 = vadd.f32 %v2607_v8, %v3377_v44 }
 0x202   : > { %v2608_v57 = vpop.f32.mrb[2].mxu1  ;;  %v3488_v14 = vadd.f32 %v3377_v44, %v1793_v56 }
 0x203   : > { %v3485_v55 = vadd.f32 %v2608_v57, %v3377_v44  ;;  %v1796_v60 = vpop.f32.mrb[3].mxu1 }
 0x204   : > { %v3491_v2 = vadd.f32 %v3377_v44, %v1796_v60  ;;  %v2031_v19 = vadd.f32 %v2030_v34, %v3488_v14 }
 0x205   : > { %v2510_v61 = vpack.c.bf16 %v3485_v55, %v3482_v58 }
 0x206   : > { %v2505_v1 = vpack.c.bf16 %v3491_v2, %v3488_v14  ;;  %v2032_v32 = vadd.f32 %v2031_v19, %v3491_v2 }
 0x207   : > { %2551 = vst [vmem:[%s3401_s15 + $0x48] sm:$0xff] %v2510_v61  }
 0x208   : > { %2550 = vst [vmem:[%s3401_s15 + $0x40] sm:$0xff] %v2505_v1   ;;  %v2033_v30 = vadd.f32 %v2032_v32, %v3482_v58 }
 0x20a   : > { %v2034_v49 = vadd.f32 %v2033_v30, %v3485_v55 }
 0x220   : > { %v2611_v13 = vpop.f32.mrb[4].mxu1 }
 0x221   : > { %v1809_v5 = vpop.f32.mrb[5].mxu1  ;;  %v3509_v18 = vadd.f32 %v2611_v13, %v3377_v44 }
 0x222   : > { %v2612_v16 = vpop.f32.mrb[6].mxu1  ;;  %v3515_v15 = vadd.f32 %v3377_v44, %v1809_v5 }
 0x223   : > { %v3512_v23 = vadd.f32 %v2612_v16, %v3377_v44  ;;  %v1812_v29 = vpop.f32.mrb[7].mxu1 }
 0x224   : > { %v3518_v10 = vadd.f32 %v3377_v44, %v1812_v29  ;;  %v2035_v53 = vadd.f32 %v2034_v49, %v3515_v15 }
 0x225   : > { %v2520_v24 = vpack.c.bf16 %v3512_v23, %v3509_v18 }
 0x226   : > { %v2515_v28 = vpack.c.bf16 %v3518_v10, %v3515_v15  ;;  %v2036_v36 = vadd.f32 %v2035_v53, %v3518_v10 }
 0x227   : > { %2553 = vst [vmem:[%s3401_s15 + $0x58] sm:$0xff] %v2520_v24  }
 0x228   : > { %2552 = vst [vmem:[%s3401_s15 + $0x50] sm:$0xff] %v2515_v28   ;;  %v2037_v26 = vadd.f32 %v2036_v36, %v3509_v18 }
 0x22a   : > { %v2038_v43 = vadd.f32 %v2037_v26, %v3512_v23 }
 0x240   : > { %v2615_v59 = vpop.f32.mrb[8].mxu1 }
 0x241   : > { %v1825_v31 = vpop.f32.mrb[9].mxu1  ;;  %v3539_v48 = vadd.f32 %v2615_v59, %v3377_v44 }
 0x242   : > { %v3535_v11 = vadd.f32 %v3377_v44, %v1825_v31  ;;  %v2616_v46 = vpop.f32.mrb[10].mxu1 }
 0x243   : > { %v3542_v50 = vadd.f32 %v2616_v46, %v3377_v44  ;;  %v1828_v51 = vpop.f32.mrb[11].mxu1 }
 0x244   : > { %v2039_v52 = vadd.f32 %v2038_v43, %v3535_v11  ;;  %v3546_v8 = vadd.f32 %v3377_v44, %v1828_v51 }
 0x245   : > { %v2530_v56 = vpack.c.bf16 %v3542_v50, %v3539_v48 }
 0x246   : > { %v2525_v54 = vpack.c.bf16 %v3546_v8, %v3535_v11  ;;  %v2040_v57 = vadd.f32 %v2039_v52, %v3546_v8 }
 0x247   : > { %2555 = vst [vmem:[%s3401_s15 + $0x68] sm:$0xff] %v2530_v56  }
 0x248   : > { %2554 = vst [vmem:[%s3401_s15 + $0x60] sm:$0xff] %v2525_v54   ;;  %v2041_v60 = vadd.f32 %v2040_v57, %v3539_v48 }
 0x24a   : > { %v2042_v61 = vadd.f32 %v2041_v60, %v3542_v50 }
 0x25e   : > { %v2619_v45 = vpop.f32.mrb[12].mxu1 }
 0x25f   : > { %v1841_v1 = vpop.f32.mrb[13].mxu1  ;;  %v3561_v6 = vadd.f32 %v2619_v45, %v3377_v44 }
 0x260   : > { %v3558_v4 = vadd.f32 %v3377_v44, %v1841_v1  ;;  %v2620_v41 = vpop.f32.mrb[14].mxu1 }
 0x261   : > { %v3564_v7 = vadd.f32 %v2620_v41, %v3377_v44  ;;  %v1844_v0 = vpop.f32.mrb[15].mxu1 }
 0x262   : > { %v2043_v20 = vadd.f32 %v2042_v61, %v3558_v4  ;;  %v3568_v12 = vadd.f32 %v3377_v44, %v1844_v0 }
 0x263   : > { %v2540_v13 = vpack.c.bf16 %v3564_v7, %v3561_v6 }
 0x264   : > { %v2535_v5 = vpack.c.bf16 %v3568_v12, %v3558_v4  ;;  %v2044_v17 = vadd.f32 %v2043_v20, %v3568_v12 }
 0x265   : > { %2557 = vst [vmem:[%s3401_s15 + $0x78] sm:$0xff] %v2540_v13  }
 0x266   : > { %2556 = vst [vmem:[%s3401_s15 + $0x70] sm:$0xff] %v2535_v5   ;;  %v2045_v16 = vadd.f32 %v2044_v17, %v3561_v6 }
 0x268   : > { %v2046_v29 = vadd.f32 %v2045_v16, %v3564_v7 }
 0x26a   : > { %v2047_v24 = vrot.slane %v2046_v29, 4 }
 0x26c   : > { %v2048_v34 = vadd.f32 %v2047_v24, %v2046_v29 }
 0x26e   : > { %v2049_v28 = vrot.slane %v2048_v34, 2 }
 0x270   : > { %v2050_v19 = vadd.f32 %v2049_v28, %v2048_v34 }
 0x272   : > { %v2051_v44 = vrot.slane %v2050_v19, 1 }
 0x274   : > { %v3579_v32 = vadd.f32 %v2051_v44, %v2050_v19 }
 0x276   : > { %v3582_v30 = vmul.f32 0.00390625, %v3579_v32 }
 0x278   : > { %v2054_v49 = vsub.f32 %v3395_v62, %v3582_v30  ;;  %v2055_v53 = vsub.f32 %v3404_v3, %v3582_v30  ;;  %v2056_v36 = vsub.f32 %v3387_v47, %v3582_v30  ;;  %v2057_v31 = vsub.f32 %v3390_v63, %v3582_v30 }
 0x279   : > { %v2058_v43 = vsub.f32 %v3428_v25, %v3582_v30  ;;  %v2059_v52 = vsub.f32 %v3431_v27, %v3582_v30  ;;  %v2060_v3 = vsub.f32 %v3422_v9, %v3582_v30  ;;  %v2061_v57 = vsub.f32 %v3425_v21, %v3582_v30 }
 0x27a   : > { %v2086_v26 = vmul.f32 %v2054_v49, %v2054_v49  ;;  %v2087_v59 = vmul.f32 %v2055_v53, %v2055_v53  ;;  %v2088_v46 = vmul.f32 %v2056_v36, %v2056_v36  ;;  %v2089_v62 = vmul.f32 %v2057_v31, %v2057_v31 }
 0x27b   : > { %v2090_v54 = vmul.f32 %v2058_v43, %v2058_v43  ;;  %v2091_v60 = vmul.f32 %v2059_v52, %v2059_v52  ;;  %v2062_v25 = vsub.f32 %v3446_v39, %v3582_v30  ;;  %v2092_v61 = vmul.f32 %v2060_v3, %v2060_v3 }
 0x27c   : > { %v2118_v51 = vadd.f32 %v2087_v59, %v2086_v26  ;;  %v2063_v27 = vsub.f32 %v3449_v40, %v3582_v30  ;;  %v2093_v1 = vmul.f32 %v2061_v57, %v2061_v57  ;;  %v2064_v9 = vsub.f32 %v3440_v33, %v3582_v30 }
 0x27d   : > { %v2094_v0 = vmul.f32 %v2062_v25, %v2062_v25  ;;  %v2065_v21 = vsub.f32 %v3443_v37, %v3582_v30  ;;  %v2066_v39 = vsub.f32 %v3464_v42, %v3582_v30  ;;  %v2067_v40 = vsub.f32 %v3467_v22, %v3582_v30 }
 0x27e   : > { %v2119_v56 = vadd.f32 %v2118_v51, %v2088_v46  ;;  %v2095_v13 = vmul.f32 %v2063_v27, %v2063_v27  ;;  %v2096_v17 = vmul.f32 %v2064_v9, %v2064_v9  ;;  %v2068_v33 = vsub.f32 %v3458_v35, %v3582_v30 }
 0x27f   : > { %v2097_v29 = vmul.f32 %v2065_v21, %v2065_v21  ;;  %v2098_v34 = vmul.f32 %v2066_v39, %v2066_v39  ;;  %v2069_v37 = vsub.f32 %v3461_v38, %v3582_v30  ;;  %v2099_v19 = vmul.f32 %v2067_v40, %v2067_v40 }
 0x280   : > { %v2120_v47 = vadd.f32 %v2119_v56, %v2089_v62  ;;  %v2070_v42 = vsub.f32 %v3488_v14, %v3582_v30  ;;  %v2100_v49 = vmul.f32 %v2068_v33, %v2068_v33  ;;  %v2071_v22 = vsub.f32 %v3491_v2, %v3582_v30 }
 0x281   : > { %v2101_v36 = vmul.f32 %v2069_v37, %v2069_v37  ;;  %v2072_v35 = vsub.f32 %v3482_v58, %v3582_v30  ;;  %v2073_v38 = vsub.f32 %v3485_v55, %v3582_v30  ;;  %v2074_v14 = vsub.f32 %v3515_v15, %v3582_v30 }
 0x282   : > { %v2121_v63 = vadd.f32 %v2120_v47, %v2090_v54  ;;  %v2102_v59 = vmul.f32 %v2070_v42, %v2070_v42  ;;  %v2103_v43 = vmul.f32 %v2071_v22, %v2071_v22  ;;  %v2075_v2 = vsub.f32 %v3518_v10, %v3582_v30 }
 0x283   : > { %v2104_v51 = vmul.f32 %v2072_v35, %v2072_v35  ;;  %v2105_v62 = vmul.f32 %v2073_v38, %v2073_v38  ;;  %v2076_v58 = vsub.f32 %v3509_v18, %v3582_v30  ;;  %v2106_v3 = vmul.f32 %v2074_v14, %v2074_v14 }
 0x284   : > { %v2122_v45 = vadd.f32 %v2121_v63, %v2091_v60  ;;  %v2077_v55 = vsub.f32 %v3512_v23, %v3582_v30  ;;  %v2107_v47 = vmul.f32 %v2075_v2, %v2075_v2  ;;  %v2078_v15 = vsub.f32 %v3535_v11, %v3582_v30 }
 0x285   : > { %v2108_v60 = vmul.f32 %v2076_v58, %v2076_v58  ;;  %v2079_v10 = vsub.f32 %v3546_v8, %v3582_v30  ;;  %v2080_v18 = vsub.f32 %v3539_v48, %v3582_v30  ;;  %v2081_v23 = vsub.f32 %v3542_v50, %v3582_v30 }
 0x286   : > { %v2123_v41 = vadd.f32 %v2122_v45, %v2092_v61  ;;  %v2109_v25 = vmul.f32 %v2077_v55, %v2077_v55  ;;  %v2110_v45 = vmul.f32 %v2078_v15, %v2078_v15  ;;  %v2082_v11 = vsub.f32 %v3558_v4, %v3582_v30 }
 0x287   : > { %v2112_v9 = vmul.f32 %v2080_v18, %v2080_v18  ;;  %v2083_v8 = vsub.f32 %v3568_v12, %v3582_v30  ;;  %v2084_v48 = vsub.f32 %v3561_v6, %v3582_v30  ;;  %v2085_v50 = vsub.f32 %v3564_v7, %v3582_v30 }
 0x288   : > { %v2124_v20 = vadd.f32 %v2123_v41, %v2093_v1  ;;  %v2111_v1 = vmul.f32 %v2079_v10, %v2079_v10 }
 0x289   : > { %v2115_v39 = vmul.f32 %v2083_v8, %v2083_v8  ;;  %v2117_v40 = vmul.f32 %v2085_v50, %v2085_v50 }
 0x28a   : > { %v2125_v5 = vadd.f32 %v2124_v20, %v2094_v0  ;;  %v2113_v20 = vmul.f32 %v2081_v23, %v2081_v23 }
 0x28c   : > { %v2126_v16 = vadd.f32 %v2125_v5, %v2095_v13  ;;  %v2114_v13 = vmul.f32 %v2082_v11, %v2082_v11 }
 0x28e   : > { %v2127_v24 = vadd.f32 %v2126_v16, %v2096_v17  ;;  %v2116_v16 = vmul.f32 %v2084_v48, %v2084_v48 }
 0x290   : > { %v2128_v28 = vadd.f32 %v2127_v24, %v2097_v29 }
 0x292   : > { %v2129_v44 = vadd.f32 %v2128_v28, %v2098_v34 }
 0x294   : > { %v2130_v53 = vadd.f32 %v2129_v44, %v2099_v19 }
 0x296   : > { %v2131_v26 = vadd.f32 %v2130_v53, %v2100_v49 }
 0x298   : > { %v2132_v31 = vadd.f32 %v2131_v26, %v2101_v36 }
 0x29a   : > { %v2133_v46 = vadd.f32 %v2132_v31, %v2102_v59 }
 0x29c   : > { %v2134_v52 = vadd.f32 %v2133_v46, %v2103_v43 }
 0x29e   : > { %v2135_v56 = vadd.f32 %v2134_v52, %v2104_v51 }
 0x2a0   : > { %v2136_v54 = vadd.f32 %v2135_v56, %v2105_v62 }
 0x2a2   : > { %v2137_v57 = vadd.f32 %v2136_v54, %v2106_v3 }
 0x2a4   : > { %v2138_v63 = vadd.f32 %v2137_v57, %v2107_v47 }
 0x2a6   : > { %v2139_v61 = vadd.f32 %v2138_v63, %v2108_v60 }
 0x2a8   : > { %v2140_v27 = vadd.f32 %v2139_v61, %v2109_v25 }
 0x2aa   : > { %v2141_v41 = vadd.f32 %v2140_v27, %v2110_v45 }
 0x2ac   : > { %v2142_v0 = vadd.f32 %v2141_v41, %v2111_v1 }
 0x2ae   : > { %v2143_v21 = vadd.f32 %v2142_v0, %v2112_v9 }
 0x2b0   : > { %v2144_v5 = vadd.f32 %v2143_v21, %v2113_v20 }
 0x2b2   : > { %v2145_v17 = vadd.f32 %v2144_v5, %v2114_v13 }
 0x2b4   : > { %v2146_v4 = vadd.f32 %v2145_v17, %v2115_v39 }
 0x2b6   : > { %v2147_v29 = vadd.f32 %v2146_v4, %v2116_v16 }
 0x2b8   : > { %v2148_v24 = vadd.f32 %v2147_v29, %v2117_v40 }
 0x2ba   : > { %v2149_v33 = vrot.slane %v2148_v24, 4 }
 0x2bc   : > { %v2150_v12 = vadd.f32 %v2149_v33, %v2148_v24 }
 0x2be   : > { %v2151_v34 = vrot.slane %v2150_v12, 2 }
 0x2c0   : > { %v2152_v28 = vadd.f32 %v2151_v34, %v2150_v12 }
 0x2c2   : > { %v2153_v37 = vrot.slane %v2152_v28, 1 }
 0x2c4   : > { %v2154_v6 = vadd.f32 %v2153_v37, %v2152_v28 }
 0x2c6   : > { %v2156_v7 = vsel %vm748_vm1, %v3579_v32, %v2154_v6 }
 0x2c7   : > { %2157 = vst [vmem:[%s438_s18] sm:$0x3] %v2156_v7 }
 0x2c8 PF: > { %s17_s23 = sadd.s32 1, %s2708_s23   ;;  %s3672_s21 = smov %s2704_s22 }
 0x2c9   : > { %p14_p5 = scmp.ge.s32.totalorder %s17_s23, 4   ;;  %s3673_s22 = smov %s3675_s24 }
 0x2cb   :  { %16 = sbr.rel (!%p14_p5) target bundleno = 2 (0x2), region = 88 }

</bundles_post_ra>
